<compile_context>
chip_gen: v7x
topology: tpu7x:2x2x1
jax: 0.10.0
libtpu: 0.0.40
codegen_flags: <defaults>
</compile_context>

<pallas_src>
import functools

import jax
import jax.numpy as jnp
from jax.experimental import pallas as pl
from jax.experimental.pallas import tpu as pltpu

_PO = 8  # sublane-aligned guard offset for the padded-plane scratch


# ------------------------------ Pallas kernel ------------------------------ #

def _fused_bottleneck_kernel(*refs, kt, planes, P2, HB, W2, PO):
    """conv1(kt,1,1)+bn1+relu -> conv2(1,3,3)+bn2+relu -> conv3+bn3+res+relu.

    Inputs (per grid step, all VMEM):
      refs[0:kt]   : kt temporal taps of the spatially padded input plane,
                     each (P2, Cin) bf16, P2 = (H+2)*(W+2).
      mask         : (P2, 1) f32, 1 at interior spatial positions, 0 at the
                     border (emulates conv2's zero padding).
      w1           : (kt, Cin, planes) bf16 (BN1 scale folded in).
      w2           : (9, planes, planes) bf16 (BN2 scale folded in).
      w3           : (planes, Cout) bf16 (BN3 scale folded in).
      b1, b2, b3   : (1, planes)/(1, planes)/(1, Cout) f32 folded BN biases.
    Output:
      o_ref        : (HB, Cout) f32, HB = H*(W+2) interior row band (the two
                     pad columns per row are garbage and sliced off outside).
    Scratch:
      y1p_ref      : (P2 + 2*PO, planes) bf16 padded y1 plane.
    """
    x_refs = refs[:kt]
    (mask_ref, w1_ref, w2_ref, w3_ref, b1_ref, b2_ref, b3_ref,
     o_ref, y1p_ref) = refs[kt:]

    # ---- conv1 (temporal) + bn1 + relu over the padded spatial plane ----
    xc = x_refs[kt // 2][...]                                   # centre tap (also residual)
    acc1 = jnp.dot(xc, w1_ref[kt // 2], preferred_element_type=jnp.float32)
    for k in range(kt):
        if k == kt // 2:
            continue
        acc1 = acc1 + jnp.dot(x_refs[k][...], w1_ref[k],
                              preferred_element_type=jnp.float32)
    y1 = jnp.maximum(acc1 + b1_ref[...], 0.0)
    y1 = y1 * mask_ref[...]                                     # zero spatial border

    # Stash y1 (bf16) in the guarded VMEM scratch; bulk store is 8-row aligned.
    zeros8 = jnp.zeros((PO, planes), y1p_ref.dtype)
    y1p_ref[0:PO, :] = zeros8
    y1p_ref[PO + P2:PO + P2 + PO, :] = zeros8
    y1p_ref[PO:PO + P2, :] = y1.astype(y1p_ref.dtype)

    # ---- conv2 (1x3x3) + bn2 + relu via 9 shifted-slice matmuls ----
    acc2 = jnp.zeros((HB, planes), jnp.float32)
    for dh in range(3):
        for dw in range(3):
            off = (dh - 1) * W2 + (dw - 1)
            start = PO + W2 + off                               # static python int >= 0
            tap = y1p_ref[start:start + HB, :]
            acc2 = acc2 + jnp.dot(tap, w2_ref[dh * 3 + dw],
                                  preferred_element_type=jnp.float32)
    y2 = jnp.maximum(acc2 + b2_ref[...], 0.0)

    # ---- conv3 (1x1x1) + bn3 + residual + relu ----
    y3 = jnp.dot(y2.astype(jnp.bfloat16), w3_ref[...],
                 preferred_element_type=jnp.float32)
    res = xc[W2:W2 + HB, :].astype(jnp.float32)                 # residual = centre x slice
    y3 = y3 + b3_ref[...] + res
    o_ref[...] = jnp.maximum(y3, 0.0).astype(o_ref.dtype)


# --------------------------------- wrapper ---------------------------------- #

def _bn_fold(gamma, beta, mean, var, eps=1e-5):
    scale = gamma / jnp.sqrt(var + eps)
    return scale, beta - mean * scale


def _tap_index_map(k):
    def imap(b_idx, t_idx):
        return (b_idx, t_idx + k, 0, 0)
    return imap


def bottleneck_forward(x_ncdhw, params, *, stride=1, temp_conv=1, temp_stride=1):
    assert stride == 1 and temp_stride == 1, (
        "only the downsample=None configuration (stride=1, temp_stride=1) is "
        "implemented")
    b, cin, t, h, w = x_ncdhw.shape
    planes = params["conv2_w"].shape[0]
    cout = 4 * planes
    assert cin == cout, "residual add requires inplanes == planes * 4"
    kt = 1 + 2 * temp_conv
    tc = temp_conv
    W2 = w + 2
    P2 = (h + 2) * W2          # padded-plane rows
    HB = h * W2                # interior row band length
    PO = _PO

    # --- layout: channels-last, pad T/H/W once, flatten the padded plane ---
    x_cl = jnp.transpose(x_ncdhw, (0, 2, 3, 4, 1))                       # [B,T,H,W,C]
    x_pad = jnp.pad(x_cl, ((0, 0), (tc, tc), (1, 1), (1, 1), (0, 0)))
    x_pad = x_pad.reshape(b, t + 2 * tc, P2, cin).astype(jnp.bfloat16)   # [B,T+2tc,P2,C]

    # --- fold BN (inference) into weights / bias, cast weights to bf16 ---
    s1, bb1 = _bn_fold(params["bn1_gamma"], params["bn1_beta"],
                       params["bn1_mean"], params["bn1_var"])
    s2, bb2 = _bn_fold(params["bn2_gamma"], params["bn2_beta"],
                       params["bn2_mean"], params["bn2_var"])
    s3, bb3 = _bn_fold(params["bn3_gamma"], params["bn3_beta"],
                       params["bn3_mean"], params["bn3_var"])

    w1 = (jnp.transpose(params["conv1_w"][:, :, :, 0, 0], (2, 1, 0))
          * s1).astype(jnp.bfloat16)                                     # [kt,Cin,planes]
    w2 = (jnp.transpose(params["conv2_w"][:, :, 0], (2, 3, 1, 0))
          .reshape(9, planes, planes) * s2).astype(jnp.bfloat16)         # [9,planes,planes]
    w3 = (jnp.transpose(params["conv3_w"][:, :, 0, 0, 0], (1, 0))
          * s3).astype(jnp.bfloat16)                                     # [planes,Cout]
    b1v = bb1.reshape(1, planes).astype(jnp.float32)
    b2v = bb2.reshape(1, planes).astype(jnp.float32)
    b3v = bb3.reshape(1, cout).astype(jnp.float32)

    # interior mask over the padded plane (1 inside, 0 on the spatial border)
    ii = jnp.arange(P2, dtype=jnp.int32) // W2
    jj = jnp.arange(P2, dtype=jnp.int32) % W2
    mask = (((ii >= 1) & (ii <= h) & (jj >= 1) & (jj <= w))
            .astype(jnp.float32).reshape(P2, 1))

    kernel = functools.partial(_fused_bottleneck_kernel, kt=kt, planes=planes,
                               P2=P2, HB=HB, W2=W2, PO=PO)

    in_specs = [pl.BlockSpec((None, None, P2, cin), _tap_index_map(k))
                for k in range(kt)]
    in_specs += [
        pl.BlockSpec((P2, 1), lambda bi, ti: (0, 0)),
        pl.BlockSpec((kt, cin, planes), lambda bi, ti: (0, 0, 0)),
        pl.BlockSpec((9, planes, planes), lambda bi, ti: (0, 0, 0)),
        pl.BlockSpec((planes, cout), lambda bi, ti: (0, 0)),
        pl.BlockSpec((1, planes), lambda bi, ti: (0, 0)),
        pl.BlockSpec((1, planes), lambda bi, ti: (0, 0)),
        pl.BlockSpec((1, cout), lambda bi, ti: (0, 0)),
    ]
    args = [x_pad] * kt + [mask, w1, w2, w3, b1v, b2v, b3v]
    out_spec = pl.BlockSpec((None, None, HB, cout), lambda bi, ti: (bi, ti, 0, 0))

    # VMEM budget (double-buffered bf16 inputs + f32 output + resident weights
    # + scratch) with 2x headroom, clamped to the v7x physical 64 MiB.
    per_step = (kt * P2 * cin * 2 + P2 * 4 + HB * cout * 4
                + (kt * cin * planes + 9 * planes * planes + planes * cout) * 2
                + (2 * planes + cout) * 4)
    vmem_need = 2 * per_step + (P2 + 2 * PO) * planes * 2
    vmem_limit = int(min(64 * 1024 * 1024, max(4 * 1024 * 1024, 2 * vmem_need)))

    flops = 2 * b * t * (P2 * cin * planes * kt
                         + HB * planes * planes * 9
                         + HB * planes * cout)
    bytes_accessed = (b * t * kt * P2 * cin * 2          # input taps (bf16)
                      + b * t * HB * cout * 4            # output (f32)
                      + (kt * cin * planes + 9 * planes * planes
                         + planes * cout) * 2)           # weights

    out = pl.pallas_call(
        kernel,
        out_shape=jax.ShapeDtypeStruct((b, t, HB, cout), jnp.float32),
        grid=(b, t),
        in_specs=in_specs,
        out_specs=out_spec,
        scratch_shapes=[pltpu.VMEM((P2 + 2 * PO, planes), jnp.bfloat16)],
        compiler_params=pltpu.CompilerParams(
            dimension_semantics=("parallel", "parallel"),
            vmem_limit_bytes=vmem_limit),
        cost_estimate=pl.CostEstimate(flops=flops, transcendentals=0,
                                      bytes_accessed=bytes_accessed),
    )(*args)

    # drop the two pad columns per row, back to NCDHW
    out = out.reshape(b, t, h, W2, cout)[:, :, :, 1:1 + w, :]
    return jnp.transpose(out, (0, 4, 1, 2, 3))


# ----------------------------- parameter init ------------------------------ #

def init_bottleneck_params(key, inplanes, planes, temp_conv):
    kt = 1 + 2 * temp_conv
    keys = jax.random.split(key, 13)

    def winit(k, shape, fan_in):
        return jax.random.normal(k, shape, jnp.float32) / jnp.sqrt(float(fan_in))

    p = {}
    # PyTorch Conv3d weight layouts: [out, in, kT, kH, kW]
    p["conv1_w"] = winit(keys[0], (planes, inplanes, kt, 1, 1), inplanes * kt)
    p["conv2_w"] = winit(keys[1], (planes, planes, 1, 3, 3), planes * 9)
    p["conv3_w"] = winit(keys[2], (planes * 4, planes, 1, 1, 1), planes)
    idx = 3
    for name, c in [("bn1", planes), ("bn2", planes), ("bn3", planes * 4)]:
        p[name + "_gamma"] = 1.0 + 0.1 * jax.random.normal(keys[idx], (c,), jnp.float32)
        p[name + "_beta"] = 0.1 * jax.random.normal(keys[idx + 1], (c,), jnp.float32)
        p[name + "_mean"] = 0.1 * jax.random.normal(keys[idx + 2], (c,), jnp.float32)
        p[name + "_var"] = 1.0 + 0.2 * jax.random.uniform(keys[idx + 3], (c,), jnp.float32)
        idx += 3  # (keys are plentiful; slight reuse overlap is harmless)
    return p


# ------------------------- pure-JAX reference check ------------------------ #

def bottleneck_reference(x, p, stride, temp_conv, temp_stride):
    dn = ("NCDHW", "OIDHW", "NCDHW")

    def bn(y, g, be, m, v, eps=1e-5):
        sh = (1, -1, 1, 1, 1)
        return ((y - m.reshape(sh)) / jnp.sqrt(v.reshape(sh) + eps)
                * g.reshape(sh) + be.reshape(sh))

    y = jax.lax.conv_general_dilated(
        x, p["conv1_w"], (temp_stride, 1, 1),
        [(temp_conv, temp_conv), (0, 0), (0, 0)], dimension_numbers=dn)
    y = jax.nn.relu(bn(y, p["bn1_gamma"], p["bn1_beta"],
                       p["bn1_mean"], p["bn1_var"]))
    y = jax.lax.conv_general_dilated(
        y, p["conv2_w"], (1, stride, stride),
        [(0, 0), (1, 1), (1, 1)], dimension_numbers=dn)
    y = jax.nn.relu(bn(y, p["bn2_gamma"], p["bn2_beta"],
                       p["bn2_mean"], p["bn2_var"]))
    y = jax.lax.conv_general_dilated(
        y, p["conv3_w"], (1, 1, 1),
        [(0, 0), (0, 0), (0, 0)], dimension_numbers=dn)
    y = bn(y, p["bn3_gamma"], p["bn3_beta"], p["bn3_mean"], p["bn3_var"])
    return jax.nn.relu(y + x)


if __name__ == "__main__":
    key = jax.random.PRNGKey(0)
    kx, kp = jax.random.split(key)

    # small shapes: batch=2, planes=4 (outplanes=16), T=4, H=W=8
    B, planes, T, H, W = 2, 4, 4, 8, 8
    inplanes = planes * 4          # residual add valid without downsample
    stride, temp_conv, temp_stride = 1, 1, 1

    x = jax.random.normal(kx, (B, inplanes, T, H, W), jnp.float32)
    params = init_bottleneck_params(kp, inplanes, planes, temp_conv)

    out = bottleneck_forward(x, params, stride=stride,
                             temp_conv=temp_conv, temp_stride=temp_stride)
    out = jax.block_until_ready(out)

    ref = bottleneck_reference(x, params, stride, temp_conv, temp_stride)
    assert out.shape == ref.shape, (out.shape, ref.shape)
    err = float(jnp.max(jnp.abs(out - ref)))
    scale = float(jnp.maximum(jnp.max(jnp.abs(ref)), 1.0))
    # bf16 MXU operands -> loosened tolerance (f32 accumulation inside).
    assert err / scale < 4e-2, f"max abs err {err} (scale {scale})"
    print("KERNEL_OK")
</pallas_src>

<mosaic_0001>
module attributes {stable_mosaic.version = 11 : i64} {
  func.func @_fused_bottleneck_kernel(%arg0: i32, %arg1: i32, %arg2: memref<1x1x100x16xbf16, #tpu.memory_space<vmem>>, %arg3: memref<1x1x100x16xbf16, #tpu.memory_space<vmem>>, %arg4: memref<1x1x100x16xbf16, #tpu.memory_space<vmem>>, %arg5: memref<100x1xf32, #tpu.memory_space<vmem>>, %arg6: memref<3x16x4xbf16, #tpu.memory_space<vmem>>, %arg7: memref<9x4x4xbf16, #tpu.memory_space<vmem>>, %arg8: memref<4x16xbf16, #tpu.memory_space<vmem>>, %arg9: memref<1x4xf32, #tpu.memory_space<vmem>>, %arg10: memref<1x4xf32, #tpu.memory_space<vmem>>, %arg11: memref<1x16xf32, #tpu.memory_space<vmem>>, %arg12: memref<1x1x80x16xf32, #tpu.memory_space<vmem>>, %arg13: memref<116x4xbf16, #tpu.memory_space<vmem>>) attributes {dimension_semantics = [#tpu.dimension_semantics<parallel>, #tpu.dimension_semantics<parallel>], iteration_bounds = array<i64: 2, 4>, scalar_prefetch = 0 : i64, scratch_operands = 1 : i64, tpu.core_type = #tpu.core_type<tc>, window_params = [{transform_indices = @transform_0, window_bounds = array<i64: 1, 1, 100, 16>}, {transform_indices = @transform_1, window_bounds = array<i64: 1, 1, 100, 16>}, {transform_indices = @transform_2, window_bounds = array<i64: 1, 1, 100, 16>}, {pipeline_mode = #tpu.pipeline_mode<synchronous>, transform_indices = @transform_3, window_bounds = array<i64: 100, 1>}, {pipeline_mode = #tpu.pipeline_mode<synchronous>, transform_indices = @transform_4, window_bounds = array<i64: 3, 16, 4>}, {pipeline_mode = #tpu.pipeline_mode<synchronous>, transform_indices = @transform_5, window_bounds = array<i64: 9, 4, 4>}, {pipeline_mode = #tpu.pipeline_mode<synchronous>, transform_indices = @transform_6, window_bounds = array<i64: 4, 16>}, {pipeline_mode = #tpu.pipeline_mode<synchronous>, transform_indices = @transform_7, window_bounds = array<i64: 1, 4>}, {pipeline_mode = #tpu.pipeline_mode<synchronous>, transform_indices = @transform_8, window_bounds = array<i64: 1, 4>}, {pipeline_mode = #tpu.pipeline_mode<synchronous>, transform_indices = @transform_9, window_bounds = array<i64: 1, 16>}, {transform_indices = @transform_10, window_bounds = array<i64: 1, 1, 80, 16>}]} {
    %c0 = arith.constant 0 : index
    %c0_0 = arith.constant 0 : index
    %c0_1 = arith.constant 0 : index
    %c0_2 = arith.constant 0 : index
    %0 = vector.load %arg3[%c0, %c0_0, %c0_1, %c0_2] : memref<1x1x100x16xbf16, #tpu.memory_space<vmem>>, vector<1x1x100x16xbf16>
    %1 = vector.shape_cast %0 : vector<1x1x100x16xbf16> to vector<100x16xbf16>
    %c1 = arith.constant 1 : index
    %c0_3 = arith.constant 0 : index
    %c0_4 = arith.constant 0 : index
    %2 = vector.load %arg6[%c1, %c0_3, %c0_4] : memref<3x16x4xbf16, #tpu.memory_space<vmem>>, vector<1x16x4xbf16>
    %3 = vector.shape_cast %2 : vector<1x16x4xbf16> to vector<16x4xbf16>
    %cst = arith.constant dense<0.000000e+00> : vector<100x4xf32>
    %4 = tpu.matmul %1, %3, %cst {dimension_numbers = #tpu.dot_dimension_numbers<[1], [0], [0], [1], [0, 0, 1, 1], [], []>} : vector<100x16xbf16>, vector<16x4xbf16>, vector<100x4xf32> -> vector<100x4xf32>
    %c0_5 = arith.constant 0 : index
    %c0_6 = arith.constant 0 : index
    %c0_7 = arith.constant 0 : index
    %c0_8 = arith.constant 0 : index
    %5 = vector.load %arg2[%c0_5, %c0_6, %c0_7, %c0_8] : memref<1x1x100x16xbf16, #tpu.memory_space<vmem>>, vector<1x1x100x16xbf16>
    %6 = vector.shape_cast %5 : vector<1x1x100x16xbf16> to vector<100x16xbf16>
    %c0_9 = arith.constant 0 : index
    %c0_10 = arith.constant 0 : index
    %c0_11 = arith.constant 0 : index
    %7 = vector.load %arg6[%c0_9, %c0_10, %c0_11] : memref<3x16x4xbf16, #tpu.memory_space<vmem>>, vector<1x16x4xbf16>
    %8 = vector.shape_cast %7 : vector<1x16x4xbf16> to vector<16x4xbf16>
    %cst_12 = arith.constant dense<0.000000e+00> : vector<100x4xf32>
    %9 = tpu.matmul %6, %8, %cst_12 {dimension_numbers = #tpu.dot_dimension_numbers<[1], [0], [0], [1], [0, 0, 1, 1], [], []>} : vector<100x16xbf16>, vector<16x4xbf16>, vector<100x4xf32> -> vector<100x4xf32>
    %10 = arith.addf %4, %9 : vector<100x4xf32>
    %c0_13 = arith.constant 0 : index
    %c0_14 = arith.constant 0 : index
    %c0_15 = arith.constant 0 : index
    %c0_16 = arith.constant 0 : index
    %11 = vector.load %arg4[%c0_13, %c0_14, %c0_15, %c0_16] : memref<1x1x100x16xbf16, #tpu.memory_space<vmem>>, vector<1x1x100x16xbf16>
    %12 = vector.shape_cast %11 : vector<1x1x100x16xbf16> to vector<100x16xbf16>
    %c2 = arith.constant 2 : index
    %c0_17 = arith.constant 0 : index
    %c0_18 = arith.constant 0 : index
    %13 = vector.load %arg6[%c2, %c0_17, %c0_18] : memref<3x16x4xbf16, #tpu.memory_space<vmem>>, vector<1x16x4xbf16>
    %14 = vector.shape_cast %13 : vector<1x16x4xbf16> to vector<16x4xbf16>
    %cst_19 = arith.constant dense<0.000000e+00> : vector<100x4xf32>
    %15 = tpu.matmul %12, %14, %cst_19 {dimension_numbers = #tpu.dot_dimension_numbers<[1], [0], [0], [1], [0, 0, 1, 1], [], []>} : vector<100x16xbf16>, vector<16x4xbf16>, vector<100x4xf32> -> vector<100x4xf32>
    %16 = arith.addf %10, %15 : vector<100x4xf32>
    %c0_20 = arith.constant 0 : index
    %c0_21 = arith.constant 0 : index
    %17 = vector.load %arg9[%c0_20, %c0_21] : memref<1x4xf32, #tpu.memory_space<vmem>>, vector<1x4xf32>
    %18 = vector.broadcast %17 : vector<1x4xf32> to vector<100x4xf32>
    %19 = arith.addf %16, %18 : vector<100x4xf32>
    %cst_22 = arith.constant 0.000000e+00 : f32
    %20 = vector.broadcast %cst_22 : f32 to vector<100x4xf32>
    %21 = arith.maximumf %19, %20 : vector<100x4xf32>
    %c0_23 = arith.constant 0 : index
    %c0_24 = arith.constant 0 : index
    %22 = vector.load %arg5[%c0_23, %c0_24] : memref<100x1xf32, #tpu.memory_space<vmem>>, vector<100x1xf32>
    %23 = vector.broadcast %22 : vector<100x1xf32> to vector<100x4xf32>
    %24 = arith.mulf %21, %23 : vector<100x4xf32>
    %cst_25 = arith.constant 0.000000e+00 : bf16
    %25 = vector.broadcast %cst_25 : bf16 to vector<8x4xbf16>
    %c0_26 = arith.constant 0 : index
    %c0_27 = arith.constant 0 : index
    %26 = vector.load %arg13[%c0_26, %c0_27] : memref<116x4xbf16, #tpu.memory_space<vmem>>, vector<8x4xbf16>
    tpu.vector_store %arg13[%c0_26, %c0_27], %25 {strides = array<i32>} : memref<116x4xbf16, #tpu.memory_space<vmem>>, vector<8x4xbf16>,
    %c108 = arith.constant 108 : index
    %c0_28 = arith.constant 0 : index
    %27 = vector.load %arg13[%c108, %c0_28] : memref<116x4xbf16, #tpu.memory_space<vmem>>, vector<8x4xbf16>
    tpu.vector_store %arg13[%c108, %c0_28], %25 {strides = array<i32>} : memref<116x4xbf16, #tpu.memory_space<vmem>>, vector<8x4xbf16>,
    %28 = arith.truncf %24 : vector<100x4xf32> to vector<100x4xbf16>
    %c8 = arith.constant 8 : index
    %c0_29 = arith.constant 0 : index
    %29 = vector.load %arg13[%c8, %c0_29] : memref<116x4xbf16, #tpu.memory_space<vmem>>, vector<100x4xbf16>
    tpu.vector_store %arg13[%c8, %c0_29], %28 {strides = array<i32>} : memref<116x4xbf16, #tpu.memory_space<vmem>>, vector<100x4xbf16>,
    %cst_30 = arith.constant 0.000000e+00 : f32
    %30 = vector.broadcast %cst_30 : f32 to vector<80x4xf32>
    %c7 = arith.constant 7 : index
    %c0_31 = arith.constant 0 : index
    %31 = vector.load %arg13[%c7, %c0_31] : memref<116x4xbf16, #tpu.memory_space<vmem>>, vector<80x4xbf16>
    %c0_32 = arith.constant 0 : index
    %c0_33 = arith.constant 0 : index
    %c0_34 = arith.constant 0 : index
    %32 = vector.load %arg7[%c0_32, %c0_33, %c0_34] : memref<9x4x4xbf16, #tpu.memory_space<vmem>>, vector<1x4x4xbf16>
    %33 = vector.shape_cast %32 : vector<1x4x4xbf16> to vector<4x4xbf16>
    %cst_35 = arith.constant dense<0.000000e+00> : vector<80x4xf32>
    %34 = tpu.matmul %31, %33, %cst_35 {dimension_numbers = #tpu.dot_dimension_numbers<[1], [0], [0], [1], [0, 0, 1, 1], [], []>} : vector<80x4xbf16>, vector<4x4xbf16>, vector<80x4xf32> -> vector<80x4xf32>
    %35 = arith.addf %30, %34 : vector<80x4xf32>
    %c8_36 = arith.constant 8 : index
    %c0_37 = arith.constant 0 : index
    %36 = vector.load %arg13[%c8_36, %c0_37] : memref<116x4xbf16, #tpu.memory_space<vmem>>, vector<80x4xbf16>
    %c1_38 = arith.constant 1 : index
    %c0_39 = arith.constant 0 : index
    %c0_40 = arith.constant 0 : index
    %37 = vector.load %arg7[%c1_38, %c0_39, %c0_40] : memref<9x4x4xbf16, #tpu.memory_space<vmem>>, vector<1x4x4xbf16>
    %38 = vector.shape_cast %37 : vector<1x4x4xbf16> to vector<4x4xbf16>
    %cst_41 = arith.constant dense<0.000000e+00> : vector<80x4xf32>
    %39 = tpu.matmul %36, %38, %cst_41 {dimension_numbers = #tpu.dot_dimension_numbers<[1], [0], [0], [1], [0, 0, 1, 1], [], []>} : vector<80x4xbf16>, vector<4x4xbf16>, vector<80x4xf32> -> vector<80x4xf32>
    %40 = arith.addf %35, %39 : vector<80x4xf32>
    %c9 = arith.constant 9 : index
    %c0_42 = arith.constant 0 : index
    %41 = vector.load %arg13[%c9, %c0_42] : memref<116x4xbf16, #tpu.memory_space<vmem>>, vector<80x4xbf16>
    %c2_43 = arith.constant 2 : index
    %c0_44 = arith.constant 0 : index
    %c0_45 = arith.constant 0 : index
    %42 = vector.load %arg7[%c2_43, %c0_44, %c0_45] : memref<9x4x4xbf16, #tpu.memory_space<vmem>>, vector<1x4x4xbf16>
    %43 = vector.shape_cast %42 : vector<1x4x4xbf16> to vector<4x4xbf16>
    %cst_46 = arith.constant dense<0.000000e+00> : vector<80x4xf32>
    %44 = tpu.matmul %41, %43, %cst_46 {dimension_numbers = #tpu.dot_dimension_numbers<[1], [0], [0], [1], [0, 0, 1, 1], [], []>} : vector<80x4xbf16>, vector<4x4xbf16>, vector<80x4xf32> -> vector<80x4xf32>
    %45 = arith.addf %40, %44 : vector<80x4xf32>
    %c17 = arith.constant 17 : index
    %c0_47 = arith.constant 0 : index
    %46 = vector.load %arg13[%c17, %c0_47] : memref<116x4xbf16, #tpu.memory_space<vmem>>, vector<80x4xbf16>
    %c3 = arith.constant 3 : index
    %c0_48 = arith.constant 0 : index
    %c0_49 = arith.constant 0 : index
    %47 = vector.load %arg7[%c3, %c0_48, %c0_49] : memref<9x4x4xbf16, #tpu.memory_space<vmem>>, vector<1x4x4xbf16>
    %48 = vector.shape_cast %47 : vector<1x4x4xbf16> to vector<4x4xbf16>
    %cst_50 = arith.constant dense<0.000000e+00> : vector<80x4xf32>
    %49 = tpu.matmul %46, %48, %cst_50 {dimension_numbers = #tpu.dot_dimension_numbers<[1], [0], [0], [1], [0, 0, 1, 1], [], []>} : vector<80x4xbf16>, vector<4x4xbf16>, vector<80x4xf32> -> vector<80x4xf32>
    %50 = arith.addf %45, %49 : vector<80x4xf32>
    %c18 = arith.constant 18 : index
    %c0_51 = arith.constant 0 : index
    %51 = vector.load %arg13[%c18, %c0_51] : memref<116x4xbf16, #tpu.memory_space<vmem>>, vector<80x4xbf16>
    %c4 = arith.constant 4 : index
    %c0_52 = arith.constant 0 : index
    %c0_53 = arith.constant 0 : index
    %52 = vector.load %arg7[%c4, %c0_52, %c0_53] : memref<9x4x4xbf16, #tpu.memory_space<vmem>>, vector<1x4x4xbf16>
    %53 = vector.shape_cast %52 : vector<1x4x4xbf16> to vector<4x4xbf16>
    %cst_54 = arith.constant dense<0.000000e+00> : vector<80x4xf32>
    %54 = tpu.matmul %51, %53, %cst_54 {dimension_numbers = #tpu.dot_dimension_numbers<[1], [0], [0], [1], [0, 0, 1, 1], [], []>} : vector<80x4xbf16>, vector<4x4xbf16>, vector<80x4xf32> -> vector<80x4xf32>
    %55 = arith.addf %50, %54 : vector<80x4xf32>
    %c19 = arith.constant 19 : index
    %c0_55 = arith.constant 0 : index
    %56 = vector.load %arg13[%c19, %c0_55] : memref<116x4xbf16, #tpu.memory_space<vmem>>, vector<80x4xbf16>
    %c5 = arith.constant 5 : index
    %c0_56 = arith.constant 0 : index
    %c0_57 = arith.constant 0 : index
    %57 = vector.load %arg7[%c5, %c0_56, %c0_57] : memref<9x4x4xbf16, #tpu.memory_space<vmem>>, vector<1x4x4xbf16>
    %58 = vector.shape_cast %57 : vector<1x4x4xbf16> to vector<4x4xbf16>
    %cst_58 = arith.constant dense<0.000000e+00> : vector<80x4xf32>
    %59 = tpu.matmul %56, %58, %cst_58 {dimension_numbers = #tpu.dot_dimension_numbers<[1], [0], [0], [1], [0, 0, 1, 1], [], []>} : vector<80x4xbf16>, vector<4x4xbf16>, vector<80x4xf32> -> vector<80x4xf32>
    %60 = arith.addf %55, %59 : vector<80x4xf32>
    %c27 = arith.constant 27 : index
    %c0_59 = arith.constant 0 : index
    %61 = vector.load %arg13[%c27, %c0_59] : memref<116x4xbf16, #tpu.memory_space<vmem>>, vector<80x4xbf16>
    %c6 = arith.constant 6 : index
    %c0_60 = arith.constant 0 : index
    %c0_61 = arith.constant 0 : index
    %62 = vector.load %arg7[%c6, %c0_60, %c0_61] : memref<9x4x4xbf16, #tpu.memory_space<vmem>>, vector<1x4x4xbf16>
    %63 = vector.shape_cast %62 : vector<1x4x4xbf16> to vector<4x4xbf16>
    %cst_62 = arith.constant dense<0.000000e+00> : vector<80x4xf32>
    %64 = tpu.matmul %61, %63, %cst_62 {dimension_numbers = #tpu.dot_dimension_numbers<[1], [0], [0], [1], [0, 0, 1, 1], [], []>} : vector<80x4xbf16>, vector<4x4xbf16>, vector<80x4xf32> -> vector<80x4xf32>
    %65 = arith.addf %60, %64 : vector<80x4xf32>
    %c28 = arith.constant 28 : index
    %c0_63 = arith.constant 0 : index
    %66 = vector.load %arg13[%c28, %c0_63] : memref<116x4xbf16, #tpu.memory_space<vmem>>, vector<80x4xbf16>
    %c7_64 = arith.constant 7 : index
    %c0_65 = arith.constant 0 : index
    %c0_66 = arith.constant 0 : index
    %67 = vector.load %arg7[%c7_64, %c0_65, %c0_66] : memref<9x4x4xbf16, #tpu.memory_space<vmem>>, vector<1x4x4xbf16>
    %68 = vector.shape_cast %67 : vector<1x4x4xbf16> to vector<4x4xbf16>
    %cst_67 = arith.constant dense<0.000000e+00> : vector<80x4xf32>
    %69 = tpu.matmul %66, %68, %cst_67 {dimension_numbers = #tpu.dot_dimension_numbers<[1], [0], [0], [1], [0, 0, 1, 1], [], []>} : vector<80x4xbf16>, vector<4x4xbf16>, vector<80x4xf32> -> vector<80x4xf32>
    %70 = arith.addf %65, %69 : vector<80x4xf32>
    %c29 = arith.constant 29 : index
    %c0_68 = arith.constant 0 : index
    %71 = vector.load %arg13[%c29, %c0_68] : memref<116x4xbf16, #tpu.memory_space<vmem>>, vector<80x4xbf16>
    %c8_69 = arith.constant 8 : index
    %c0_70 = arith.constant 0 : index
    %c0_71 = arith.constant 0 : index
    %72 = vector.load %arg7[%c8_69, %c0_70, %c0_71] : memref<9x4x4xbf16, #tpu.memory_space<vmem>>, vector<1x4x4xbf16>
    %73 = vector.shape_cast %72 : vector<1x4x4xbf16> to vector<4x4xbf16>
    %cst_72 = arith.constant dense<0.000000e+00> : vector<80x4xf32>
    %74 = tpu.matmul %71, %73, %cst_72 {dimension_numbers = #tpu.dot_dimension_numbers<[1], [0], [0], [1], [0, 0, 1, 1], [], []>} : vector<80x4xbf16>, vector<4x4xbf16>, vector<80x4xf32> -> vector<80x4xf32>
    %75 = arith.addf %70, %74 : vector<80x4xf32>
    %c0_73 = arith.constant 0 : index
    %c0_74 = arith.constant 0 : index
    %76 = vector.load %arg10[%c0_73, %c0_74] : memref<1x4xf32, #tpu.memory_space<vmem>>, vector<1x4xf32>
    %77 = vector.broadcast %76 : vector<1x4xf32> to vector<80x4xf32>
    %78 = arith.addf %75, %77 : vector<80x4xf32>
    %cst_75 = arith.constant 0.000000e+00 : f32
    %79 = vector.broadcast %cst_75 : f32 to vector<80x4xf32>
    %80 = arith.maximumf %78, %79 : vector<80x4xf32>
    %81 = arith.truncf %80 : vector<80x4xf32> to vector<80x4xbf16>
    %c0_76 = arith.constant 0 : index
    %c0_77 = arith.constant 0 : index
    %82 = vector.load %arg8[%c0_76, %c0_77] : memref<4x16xbf16, #tpu.memory_space<vmem>>, vector<4x16xbf16>
    %cst_78 = arith.constant dense<0.000000e+00> : vector<80x16xf32>
    %83 = tpu.matmul %81, %82, %cst_78 {dimension_numbers = #tpu.dot_dimension_numbers<[1], [0], [0], [1], [0, 0, 1, 1], [], []>} : vector<80x4xbf16>, vector<4x16xbf16>, vector<80x16xf32> -> vector<80x16xf32>
    %84 = vector.extract_strided_slice %1 {offsets = [10, 0], sizes = [80, 16], strides = [1, 1]} : vector<100x16xbf16> to vector<80x16xbf16>
    %85 = arith.extf %84 : vector<80x16xbf16> to vector<80x16xf32>
    %c0_79 = arith.constant 0 : index
    %c0_80 = arith.constant 0 : index
    %86 = vector.load %arg11[%c0_79, %c0_80] : memref<1x16xf32, #tpu.memory_space<vmem>>, vector<1x16xf32>
    %87 = vector.broadcast %86 : vector<1x16xf32> to vector<80x16xf32>
    %88 = arith.addf %83, %87 : vector<80x16xf32>
    %89 = arith.addf %88, %85 : vector<80x16xf32>
    %cst_81 = arith.constant 0.000000e+00 : f32
    %90 = vector.broadcast %cst_81 : f32 to vector<80x16xf32>
    %91 = arith.maximumf %89, %90 : vector<80x16xf32>
    %c0_82 = arith.constant 0 : index
    %c0_83 = arith.constant 0 : index
    %c0_84 = arith.constant 0 : index
    %c0_85 = arith.constant 0 : index
    %92 = vector.load %arg12[%c0_82, %c0_83, %c0_84, %c0_85] : memref<1x1x80x16xf32, #tpu.memory_space<vmem>>, vector<1x1x80x16xf32>
    %93 = vector.shape_cast %92 : vector<1x1x80x16xf32> to vector<80x16xf32>
    %94 = vector.shape_cast %91 : vector<80x16xf32> to vector<1x1x80x16xf32>
    tpu.vector_store %arg12[%c0_82, %c0_83, %c0_84, %c0_85], %94 {strides = array<i32>} : memref<1x1x80x16xf32, #tpu.memory_space<vmem>>, vector<1x1x80x16xf32>,
    return
  }
  func.func @transform_0(%arg0: i32, %arg1: i32) -> (i32, i32, i32, i32) {
    %c0_i32 = arith.constant 0 : i32
    %0 = arith.addi %arg1, %c0_i32 : i32
    %c0_i32_0 = arith.constant 0 : i32
    %c0_i32_1 = arith.constant 0 : i32
    %c0_i32_2 = arith.constant 0 : i32
    return %arg0, %0, %c0_i32_0, %c0_i32_1 : i32, i32, i32, i32
  }
  func.func @transform_1(%arg0: i32, %arg1: i32) -> (i32, i32, i32, i32) {
    %c1_i32 = arith.constant 1 : i32
    %0 = arith.addi %arg1, %c1_i32 : i32
    %c0_i32 = arith.constant 0 : i32
    %c0_i32_0 = arith.constant 0 : i32
    %c0_i32_1 = arith.constant 0 : i32
    return %arg0, %0, %c0_i32, %c0_i32_0 : i32, i32, i32, i32
  }
  func.func @transform_2(%arg0: i32, %arg1: i32) -> (i32, i32, i32, i32) {
    %c2_i32 = arith.constant 2 : i32
    %0 = arith.addi %arg1, %c2_i32 : i32
    %c0_i32 = arith.constant 0 : i32
    %c0_i32_0 = arith.constant 0 : i32
    %c0_i32_1 = arith.constant 0 : i32
    return %arg0, %0, %c0_i32, %c0_i32_0 : i32, i32, i32, i32
  }
  func.func @transform_3(%arg0: i32, %arg1: i32) -> (i32, i32) {
    %c0_i32 = arith.constant 0 : i32
    %c0_i32_0 = arith.constant 0 : i32
    %c0_i32_1 = arith.constant 0 : i32
    return %c0_i32, %c0_i32_0 : i32, i32
  }
  func.func @transform_4(%arg0: i32, %arg1: i32) -> (i32, i32, i32) {
    %c0_i32 = arith.constant 0 : i32
    %c0_i32_0 = arith.constant 0 : i32
    %c0_i32_1 = arith.constant 0 : i32
    %c0_i32_2 = arith.constant 0 : i32
    return %c0_i32, %c0_i32_0, %c0_i32_1 : i32, i32, i32
  }
  func.func @transform_5(%arg0: i32, %arg1: i32) -> (i32, i32, i32) {
    %c0_i32 = arith.constant 0 : i32
    %c0_i32_0 = arith.constant 0 : i32
    %c0_i32_1 = arith.constant 0 : i32
    %c0_i32_2 = arith.constant 0 : i32
    return %c0_i32, %c0_i32_0, %c0_i32_1 : i32, i32, i32
  }
  func.func @transform_6(%arg0: i32, %arg1: i32) -> (i32, i32) {
    %c0_i32 = arith.constant 0 : i32
    %c0_i32_0 = arith.constant 0 : i32
    %c0_i32_1 = arith.constant 0 : i32
    return %c0_i32, %c0_i32_0 : i32, i32
  }
  func.func @transform_7(%arg0: i32, %arg1: i32) -> (i32, i32) {
    %c0_i32 = arith.constant 0 : i32
    %c0_i32_0 = arith.constant 0 : i32
    %c0_i32_1 = arith.constant 0 : i32
    return %c0_i32, %c0_i32_0 : i32, i32
  }
  func.func @transform_8(%arg0: i32, %arg1: i32) -> (i32, i32) {
    %c0_i32 = arith.constant 0 : i32
    %c0_i32_0 = arith.constant 0 : i32
    %c0_i32_1 = arith.constant 0 : i32
    return %c0_i32, %c0_i32_0 : i32, i32
  }
  func.func @transform_9(%arg0: i32, %arg1: i32) -> (i32, i32) {
    %c0_i32 = arith.constant 0 : i32
    %c0_i32_0 = arith.constant 0 : i32
    %c0_i32_1 = arith.constant 0 : i32
    return %c0_i32, %c0_i32_0 : i32, i32
  }
  func.func @transform_10(%arg0: i32, %arg1: i32) -> (i32, i32, i32, i32) {
    %c0_i32 = arith.constant 0 : i32
    %c0_i32_0 = arith.constant 0 : i32
    %c0_i32_1 = arith.constant 0 : i32
    return %arg0, %arg1, %c0_i32, %c0_i32_0 : i32, i32, i32, i32
  }
}

</mosaic_0001>

<bundles_post_ra>
// kernel: tpu_custom_call.1
= control target key start
LH: loop header
LB: loop body
LE: loop exit
PB: predicated region body
PF: predicated region fallthrough
CT: control target
= control target key end

     0   :  { %s3694_s13 = smov 0   ;;  %s3696_s14 = smov 0   ;;  %s4487_s0 = inlined_call_operand.vmem [shape: bf16[2,6,100,16], index: 0, kind: input, shape index: {}]   ;;  %s4488_s1 = inlined_call_operand.vmem [shape: bf16[2,6,100,16], index: 1, kind: input, shape index: {}]   ;;  %s4489_s2 = inlined_call_operand.vmem [shape: bf16[2,6,100,16], index: 2, kind: input, shape index: {}]   ;;  %s4490_s3 = inlined_call_operand.vmem [shape: f32[100,1], index: 3, kind: input, shape index: {}]   ;;  %s4491_s4 = inlined_call_operand.vmem [shape: bf16[3,16,4], index: 4, kind: input, shape index: {}]   ;;  %s4492_s5 = inlined_call_operand.vmem [shape: bf16[9,4,4], index: 5, kind: input, shape index: {}]   ;;  %s4493_s6 = inlined_call_operand.vmem [shape: bf16[4,16], index: 6, kind: input, shape index: {}]   ;;  %s4494_s7 = inlined_call_operand.vmem [shape: f32[1,4], index: 7, kind: input, shape index: {}]   ;;  %s4495_s8 = inlined_call_operand.vmem [shape: f32[1,4], index: 8, kind: input, shape index: {}]   ;;  %s4496_s9 = inlined_call_operand.vmem [shape: f32[1,16], index: 9, kind: input, shape index: {}]   ;;  %s4497_s10 = inlined_call_operand.vmem [shape: f32[2,4,80,16], index: 10, kind: output, shape index: {}]  }
   0x1   :  { %s3698_s15 = smov 0   ;;  %s3700_s16 = smov 0  }
   0x2   :  { %s3702_s17 = smov 0  }
   0x3 LB: > { %s29_s18 = sadd.s32 1, %s3626_s15  ;;  %s32_s19 = sadd.s32 1, %s3630_s16  ;;  %s3634_s17 = sphi %s3702_s17, %s20_s17   ;;  %s3630_s16 = sphi %s3700_s16, %s4503_s16   ;;  %s3626_s15 = sphi %s3698_s15, %s4502_s15   ;;  %s3622_s14 = sphi %s3696_s14, %s4501_s14   ;;  %s3618_s13 = sphi %s3694_s13, %s4500_s13  }
   0x4   : > { %p30_p0 = scmp.ge.s32.totalorder %s29_s18, 4  ;;  %p2909_p1 = scmp.ge.s32.totalorder %s3634_s17, 1 }
   0x5   : > { %p372_p2 = scmp.lt.s32.totalorder %s3634_s17, 9 }
   0x6   : > { %s4505_s18 = smov (%p30_p0, %s29_s18), 0  ;;  %s4507_s19 = smov (!%p30_p0, %s32_s19), %s3630_s16 }
   0x7   : > { %p373_p3 = pnand %p2909_p1, %p372_p2  ;;  %p34_p4 = scmp.ge.s32.totalorder %s4507_s19, 2 }
   0x8   : > { %v3532_v0 = vld [vmem:[%s4491_s4] sm:$0xff] (!%p373_p3)   ;;  %v3636_v1 = vmov (!%p373_p3), 0.0   ;;  %p438_p5 = scmp.lt.s32.totalorder (!%p373_p3), %s3622_s14, 1  ;;  %p440_p6 = scmp.lt.s32.totalorder (!%p373_p3), %s3618_s13, 5  ;;  %vm3637_vm0 = vmmov (!%p373_p3), 0   ;;  %v3534_v2 = vld [vmem:[%s4491_s4 + $0x8] sm:$0xff] (!%p373_p3)  }
   0x9   : > { %s4509_s19 = smov (%p34_p4, %s4507_s19), 0  ;;  %376 = sbr.rel (%p373_p3) target bundleno = 960 (0x3c0), region = 60 }
   0xa   : > { %4498 = sst [smem:[#allocation3_spill]] %s4509_s19  ;;  %3169 = vmatprep.subr.bf16.mxu0 (!%p373_p3), %v3636_v1  ;;  %3479 = vmatprep.subr.bf16.mxu1 (!%p373_p3), %v3636_v1  ;;  %s447_s24 = sadd.s32 (!%p373_p3), 1, %s3618_s13  ;;  %vm1108_vm1 = vcmask (!%p373_p3), 27648   ;;  %v3638_v3 = vmov (!%p373_p3), 0   ;;  %v1017_v4 = vld [vmem:[%s4490_s3] sm:$0xff] (!%p373_p3)  ;;  %v1019_v5 = vld [vmem:[%s4490_s3 + $0x10] sm:$0xff] (!%p373_p3) }
   0xb   : > { %3170 = vmatpush3.bf16.msra.mxu0 (!%p373_p3), %v3532_v0  ;;  %3171 = vmatprep.mubr.msk.bf16.mxu0 (!%p373_p3), %vm3637_vm0, %v3636_v1  ;;  %1109 = vst.msk [vmem:[#allocation2] sm:$0xf] (!%p373_p3), %vm1108_vm1, %v3638_v3  ;;  %p450_p7 = scmp.lt.s32.totalorder (!%p373_p3), %s447_s24, 5  ;;  %s458_s12 = sadd.s32 (!%p373_p3), 2, %s3618_s13  ;;  %v1018_v6 = vld [vmem:[%s4490_s3 + $0x8] sm:$0xff] (!%p373_p3)  ;;  %v1020_v7 = vld [vmem:[%s4490_s3 + $0x18] sm:$0xff] (!%p373_p3) }
   0xc   : > { %3199 = vmatprep.subr.bf16.mxu0 (!%p373_p3), %v3636_v1  ;;  %3205 = vmatprep.mubr.msk.bf16.mxu1 (!%p373_p3), %vm3637_vm0, %v3636_v1  ;;  %vm549_vm2 = vcmask (!%p373_p3), 130048   ;;  %p461_p8 = scmp.lt.s32.totalorder (!%p373_p3), %s458_s12, 5  ;;  %v1021_v8 = vld [vmem:[%s4490_s3 + $0x20] sm:$0xff] (!%p373_p3)  ;;  %v1022_v10 = vld [vmem:[%s4490_s3 + $0x28] sm:$0xff] (!%p373_p3)  ;;  %v1023_v12 = vld [vmem:[%s4490_s3 + $0x30] sm:$0xff] (!%p373_p3)  ;;  %vm1235_vm3 = vcmask (!%p373_p3), 1041408  }
   0xd   : > { %3480 = vmatpush3.bf16.msra.mxu1 (!%p373_p3), %v3534_v2  ;;  %3530 = vset.pattern.permute.xlu0 (!%p373_p3), %v3638_v3  ;;  %v1024_v13 = vld [vmem:[%s4490_s3 + $0x38] sm:$0xff] (!%p373_p3)  ;;  %v1025_v16 = vld [vmem:[%s4490_s3 + $0x40] sm:$0xff] (!%p373_p3)  ;;  %v1026_v17 = vld [vmem:[%s4490_s3 + $0x48] sm:$0xff] (!%p373_p3)  ;;  %vm1112_vm4 = vcmask (!%p373_p3), 25600   ;;  %vm1219_vm5 = vcmask (!%p373_p3), 31744   ;;  %vm1844_vm8 = vcmask (!%p373_p3), 1046528  }
   0xe   : > { %1032 = vperm.xlu0 (!%p373_p3), %3530, %v1017_v4   ;;  %3531 = vset.pattern.permute.xlu1 (!%p373_p3), %v3638_v3  ;;  %v1027_v18 = vld [vmem:[%s4490_s3 + $0x50] sm:$0xff] (!%p373_p3)  ;;  %v1029_v19 = vld [vmem:[%s4490_s3 + $0x60] sm:$0xf] (!%p373_p3)  ;;  %v1028_v20 = vld [vmem:[%s4490_s3 + $0x58] sm:$0xff] (!%p373_p3)  ;;  %vm1506_vm6 = vsmask.f32 (!%p373_p3), 7424 }
   0xf   : > { %1042 = vperm.xlu1 (!%p373_p3), %3531, %v1019_v5   ;;  %3259 = vmatprep.subr.bf16.mxu1 (!%p373_p3), %v3636_v1  ;;  %v3548_v31 = vld [vmem:[%s4491_s4 + $0x10] sm:$0xff] (!%p373_p3)   ;;  %v2977_v39 = vld [vmem:[%s4492_s5 + $0x2] sm:$0x3] (!%p373_p3)  ;;  %v2999_v41 = vld [vmem:[%s4492_s5 + $0x4] sm:$0x3] (!%p373_p3)  ;;  %vm2299_vm9 = vcmask (!%p373_p3), 1045504  }
  0x10   : > { %s4511_s14 = smov (!%p438_p5, %s3622_s14), 1  ;;  %s4513_s24 = smov (!%p450_p7, %s447_s24), 5  ;;  %v1237_v40 = vsel %vm1235_vm3, %v2977_v39, 0  ;;  %v1567_v42 = vsel %vm1235_vm3, %v2999_v41, 0  ;;  %vm1320_vm7 = vsmask.f32 4352 }
  0x11   : > { %s441_s25 = scalar_select %p440_p6, %s3618_s13, 5  ;;  %vm1963_vm10 = vsmask.f32 6400  ;;  %vm2418_vm11 = vsmask.f32 5376 }
  0x12   : > { %s3749_s28 = smul.u32 78, %s4511_s14  ;;  %1037 = vperm.xlu0 %3530, %v1018_v6   ;;  %s4515_s12 = smov (!%p461_p8, %s458_s12), 5 }
  0x13   : > { %s3481_s11 = smul.u32 13, %s441_s25  ;;  %1047 = vperm.xlu1 %3531, %v1020_v7   ;;  %p471_p9 = scmp.lt.s32.totalorder %s3618_s13, 3 }
  0x14   : > { %s3483_s19 = smul.u32 13, %s4513_s24 }
  0x15   : > { %s444_s26 = sadd.s32 %s3749_s28, %s3481_s11  ;;  %s3484_s20 = smul.u32 13, %s4515_s12 }
  0x16   : > { %s2910_s27 = sshll.u32 %s444_s26, 2  ;;  %s454_s22 = sadd.s32 %s3483_s19, %s3749_s28  ;;  %1052 = vperm.xlu0 %3530, %v1021_v8  }
  0x17   : > { %s3766_s30 = scalar_lea.vmem %s4487_s0, %s2910_s27  ;;  %s2911_s11 = sshll.u32 %s454_s22, 2  ;;  %1057 = vperm.xlu1 %3531, %v1022_v10  }
  0x18   : > { %v3533_v9 = vld [vmem:[%s3766_s30] sm:$0xff]   ;;  %s3780_s29 = scalar_lea.vmem %s4488_s1, %s2911_s11  ;;  %v3535_v14 = vld [vmem:[%s3766_s30 + $0x8] sm:$0xff]   ;;  %s465_s11 = sadd.s32 %s3484_s20, %s3749_s28  ;;  %v3537_v21 = vld [vmem:[%s3766_s30 + $0x10] sm:$0xff]  }
  0x19   : > { %3172 = vmatmul.mubr.msk.bf16.vlgmr.msra.gmra.mrb[0].mxu0 %vm549_vm2, %v3533_v9  ;;  %v481_v11 = vld [vmem:[%s3780_s29 + $0x8] sm:$0xff]   ;;  %v483_v15 = vld [vmem:[%s3780_s29 + $0x10] sm:$0xff]   ;;  %s2912_s12 = sshll.u32 %s465_s11, 2  ;;  %v485_v22 = vld [vmem:[%s3780_s29 + $0x18] sm:$0xff]   ;;  %s4517_s13 = smov (!%p471_p9, %s3618_s13), 3 }
  0x1a   : > { %3200 = vmatpush3.bf16.msra.mxu0 %v3534_v2  ;;  %3175 = vmatprep.mubr.msk.bf16.mxu0 %vm3637_vm0, %v3636_v1  ;;  %s3808_s21 = scalar_lea.vmem %s4489_s2, %s2912_s12  ;;  %v3539_v23 = vld [vmem:[%s3766_s30 + $0x18] sm:$0xff]   ;;  %v487_v24 = vld [vmem:[%s3780_s29 + $0x20] sm:$0xff]   ;;  %v489_v26 = vld [vmem:[%s3780_s29 + $0x28] sm:$0xff]   ;;  %s3486_s12 = smul.u32 40, %s4511_s14 }
  0x1b   : > { %3229 = vmatprep.subr.bf16.mxu0 %v3636_v1  ;;  %3206 = vmatmul.mubr.msk.bf16.vlgmr.msra.gmra.mrb[0].mxu1 %vm549_vm2, %v481_v11  ;;  %v3541_v25 = vld [vmem:[%s3766_s30 + $0x20] sm:$0xff]   ;;  %v3543_v27 = vld [vmem:[%s3766_s30 + $0x28] sm:$0xff]   ;;  %v3546_v28 = vld [vmem:[%s3780_s29 + $0x30] ss:$0 sps:$4 sm:$0x33]   ;;  %s3485_s26 = smul.u32 10, %s4517_s13 }
  0x1c   : > { %1062 = vperm.xlu0 %3530, %v1023_v12   ;;  %3209 = vmatprep.mubr.msk.bf16.mxu1 %vm3637_vm0, %v3636_v1  ;;  %v3545_v29 = vld [vmem:[%s3766_s30 + $0x30] ss:$0 sps:$4 sm:$0x33]   ;;  %v479_v30 = vld [vmem:[%s3780_s29] sm:$0xff]   ;;  %v3550_v33 = vld [vmem:[%s3808_s21 + $0x8] sm:$0xff]  }
  0x1d   : > { %1067 = vperm.xlu1 %3531, %v1024_v13   ;;  %v3549_v32 = vld [vmem:[%s3808_s21] sm:$0xff]   ;;  %v3551_v34 = vld [vmem:[%s3808_s21 + $0x10] sm:$0xff]   ;;  %v3552_v35 = vld [vmem:[%s3808_s21 + $0x18] sm:$0xff]   ;;  %3260 = vmatpush3.bf16.msra.mxu1 %v1237_v40  ;;  %s475_s30 = sadd.s32 %s3486_s12, %s3485_s26 }
  0x1e   : > { %v3553_v36 = vld [vmem:[%s3808_s21 + $0x20] sm:$0xff]   ;;  %v3554_v37 = vld [vmem:[%s3808_s21 + $0x28] sm:$0xff]   ;;  %v3555_v38 = vld [vmem:[%s3808_s21 + $0x30] ss:$0 sps:$4 sm:$0x33]   ;;  %3281 = vmatprep.subr.bf16.mxu1 %v3636_v1  ;;  %s2913_s25 = sshll.u32 %s475_s30, 3 }
  0x1f   : > { %s4431_s21 = scalar_lea.vmem %s4497_s10, %s2913_s25 }
  0x20   : > { %1072 = vperm.xlu0 %3530, %v1025_v16  }
  0x21   : > { %3176 = vmatmul.mubr.msk.bf16.gmra.mrb[4].mxu0 %vm549_vm2, %v3535_v14  ;;  %1077 = vperm.xlu1 %3531, %v1026_v17  }
  0x22   : > { %3179 = vmatprep.mubr.msk.bf16.mxu0 %vm3637_vm0, %v3636_v1 }
  0x23   : > { %3210 = vmatmul.mubr.msk.bf16.gmra.mrb[4].mxu1 %vm549_vm2, %v483_v15 }
  0x24   : > { %1082 = vperm.xlu0 %3530, %v1027_v18   ;;  %3213 = vmatprep.mubr.msk.bf16.mxu1 %vm3637_vm0, %v3636_v1 }
  0x25   : > { %1087 = vperm.xlu1 %3531, %v1028_v20  }
  0x28   : > { %1092 = vperm.xlu0 %3530, %v1029_v19  }
  0x29   : > { %3180 = vmatmul.mubr.msk.bf16.gmra.mrb[8].mxu0 %vm549_vm2, %v3537_v21 }
  0x2a   : > { %3183 = vmatprep.mubr.msk.bf16.mxu0 %vm3637_vm0, %v3636_v1 }
  0x2b   : > { %3214 = vmatmul.mubr.msk.bf16.gmra.mrb[8].mxu1 %vm549_vm2, %v485_v22 }
  0x2c   : > { %3217 = vmatprep.mubr.msk.bf16.mxu1 %vm3637_vm0, %v3636_v1 }
  0x31   : > { %3184 = vmatmul.mubr.msk.bf16.gmra.mrb[12].mxu0 %vm549_vm2, %v3539_v23 }
  0x32   : > { %3187 = vmatprep.mubr.msk.bf16.mxu0 %vm3637_vm0, %v3636_v1 }
  0x33   : > { %3218 = vmatmul.mubr.msk.bf16.gmra.mrb[12].mxu1 %vm549_vm2, %v487_v24 }
  0x34   : > { %3221 = vmatprep.mubr.msk.bf16.mxu1 %vm3637_vm0, %v3636_v1 }
  0x39   : > { %3188 = vmatmul.mubr.msk.bf16.gmra.mrb[16].mxu0 %vm549_vm2, %v3541_v25 }
  0x3a   : > { %3191 = vmatprep.mubr.msk.bf16.mxu0 %vm3637_vm0, %v3636_v1 }
  0x3b   : > { %3222 = vmatmul.mubr.msk.bf16.gmra.mrb[16].mxu1 %vm549_vm2, %v489_v26 }
  0x3c   : > { %3225 = vmatprep.mubr.msk.bf16.mxu1 %vm3637_vm0, %v3636_v1 }
  0x41   : > { %3192 = vmatmul.mubr.msk.bf16.gmra.mrb[20].mxu0 %vm549_vm2, %v3543_v27 }
  0x42   : > { %3195 = vmatprep.mubr.msk.bf16.mxu0 %vm3637_vm0, %v3636_v1 }
  0x43   : > { %3226 = vmatmul.mubr.msk.bf16.gmra.mrb[20].mxu1 %vm549_vm2, %v3546_v28 }
  0x44   : > { %3261 = vmatprep.mubr.msk.bf16.mxu1 %vm3637_vm0, %v3636_v1 }
  0x49   : > { %3196 = vmatmul.mubr.msk.bf16.gmra.mrb[24].mxu0 %vm549_vm2, %v3545_v29 }
  0x4a   : > { %3201 = vmatprep.mubr.msk.bf16.mxu0 %vm3637_vm0, %v3636_v1 }
  0x51   : > { %3202 = vmatmul.mubr.msk.bf16.vlgmr.msra.gmra.mrb[28].mxu0 %vm549_vm2, %v479_v30 }
  0x52   : > { %3230 = vmatpush3.bf16.msra.mxu0 %v3548_v31  ;;  %3231 = vmatprep.mubr.msk.bf16.mxu0 %vm3637_vm0, %v3636_v1 }
  0x53   : > { %3303 = vmatprep.subr.bf16.mxu0 %v3636_v1 }
  0x59   : > { %3232 = vmatmul.mubr.msk.bf16.vlgmr.msra.gmra.mrb[32].mxu0 %vm549_vm2, %v3549_v32 }
  0x5a   : > { %3235 = vmatprep.mubr.msk.bf16.mxu0 %vm3637_vm0, %v3636_v1  ;;  %3304 = vmatpush3.bf16.msra.mxu0 %v1567_v42 }
  0x5b   : > { %3347 = vmatprep.subr.bf16.mxu0 %v3636_v1 }
  0x61   : > { %3236 = vmatmul.mubr.msk.bf16.gmra.mrb[36].mxu0 %vm549_vm2, %v3550_v33 }
  0x62   : > { %3239 = vmatprep.mubr.msk.bf16.mxu0 %vm3637_vm0, %v3636_v1 }
  0x69   : > { %3240 = vmatmul.mubr.msk.bf16.gmra.mrb[40].mxu0 %vm549_vm2, %v3551_v34 }
  0x6a   : > { %3243 = vmatprep.mubr.msk.bf16.mxu0 %vm3637_vm0, %v3636_v1 }
  0x71   : > { %3244 = vmatmul.mubr.msk.bf16.gmra.mrb[44].mxu0 %vm549_vm2, %v3552_v35 }
  0x72   : > { %3247 = vmatprep.mubr.msk.bf16.mxu0 %vm3637_vm0, %v3636_v1 }
  0x79   : > { %3248 = vmatmul.mubr.msk.bf16.gmra.mrb[48].mxu0 %vm549_vm2, %v3553_v36 }
  0x7a   : > { %3251 = vmatprep.mubr.msk.bf16.mxu0 %vm3637_vm0, %v3636_v1 }
  0x81   : > { %3252 = vmatmul.mubr.msk.bf16.gmra.mrb[52].mxu0 %vm549_vm2, %v3554_v37 }
  0x82   : > { %3255 = vmatprep.mubr.msk.bf16.mxu0 %vm3637_vm0, %v3636_v1 }
  0x89   : > { %3256 = vmatmul.mubr.msk.bf16.gmra.mrb[56].mxu0 %vm549_vm2, %v3555_v38 }
  0x8a   : > { %3305 = vmatprep.mubr.msk.bf16.mxu0 %vm3637_vm0, %v3636_v1 }
  0xec   : > { %v3906_v43 = vpop.f32.mrb[0].mxu0 }
  0xed   : > { %v3173_v44 = vpop.f32.mrb[1].mxu0 }
  0xee   : > { %v3908_v45 = vpop.f32.mrb[2].mxu0  ;;  %v761_v47 = vpop.f32.mrb[0].mxu1 }
  0xef   : > { %v3174_v46 = vpop.f32.mrb[3].mxu0  ;;  %v3207_v48 = vpop.f32.mrb[1].mxu1 }
  0xf0   : > { %v764_v49 = vpop.f32.mrb[2].mxu1 }
  0xf1   : > { %v3208_v50 = vpop.f32.mrb[3].mxu1 }
  0xf4   : > { %v613_v51 = vpop.f32.mrb[4].mxu0 }
  0xf5   : > { %v3910_v52 = vadd.f32 %v761_v47, %v613_v51  ;;  %v3177_v53 = vpop.f32.mrb[5].mxu0 }
  0xf6   : > { %v616_v54 = vpop.f32.mrb[6].mxu0  ;;  %v769_v57 = vpop.f32.mrb[4].mxu1  ;;  %v3937_v53 = vld [vmem:[%s4494_s7] ss:$0 sm:$0xff] }
  0xf7   : > { %v3912_v55 = vadd.f32 %v764_v49, %v616_v54  ;;  %v3178_v56 = vpop.f32.mrb[7].mxu0  ;;  %v3211_v58 = vpop.f32.mrb[5].mxu1 }
  0xf8   : > { %v772_v59 = vpop.f32.mrb[6].mxu1 }
  0xf9   : > { %v3212_v60 = vpop.f32.mrb[7].mxu1 }
  0xfc   : > { %v621_v61 = vpop.f32.mrb[8].mxu0 }
  0xfd   : > { %v3914_v62 = vadd.f32 %v769_v57, %v621_v61  ;;  %v3181_v63 = vpop.f32.mrb[9].mxu0  ;;  %v1033_v57 = vpop.permute.xlu0 %1032 }
  0xfe   : > { %v624_v0 = vpop.f32.mrb[10].mxu0  ;;  %v777_v4 = vpop.f32.mrb[8].mxu1 }
  0xff   : > { %v3916_v2 = vadd.f32 %v772_v59, %v624_v0  ;;  %v3182_v3 = vpop.f32.mrb[11].mxu0  ;;  %v3215_v5 = vpop.f32.mrb[9].mxu1 }
 0x100   : > { %v780_v6 = vpop.f32.mrb[10].mxu1 }
 0x101   : > { %v3216_v7 = vpop.f32.mrb[11].mxu1  ;;  %v1038_v3 = vpop.permute.xlu0 %1037 }
 0x104   : > { %v629_v8 = vpop.f32.mrb[12].mxu0 }
 0x105   : > { %v3918_v9 = vadd.f32 %v777_v4, %v629_v8  ;;  %v3185_v10 = vpop.f32.mrb[13].mxu0 }
 0x106   : > { %v632_v11 = vpop.f32.mrb[14].mxu0  ;;  %v785_v14 = vpop.f32.mrb[12].mxu1 }
 0x107   : > { %v3920_v12 = vadd.f32 %v780_v6, %v632_v11  ;;  %v3186_v13 = vpop.f32.mrb[15].mxu0  ;;  %v3219_v15 = vpop.f32.mrb[13].mxu1 }
 0x108   : > { %v788_v16 = vpop.f32.mrb[14].mxu1  ;;  %v1043_v10 = vpop.permute.xlu1 %1042 }
 0x109   : > { %v3220_v17 = vpop.f32.mrb[15].mxu1 }
 0x10c   : > { %v637_v18 = vpop.f32.mrb[16].mxu0 }
 0x10d   : > { %v3922_v19 = vadd.f32 %v785_v14, %v637_v18  ;;  %v3189_v20 = vpop.f32.mrb[17].mxu0 }
 0x10e   : > { %v640_v21 = vpop.f32.mrb[18].mxu0  ;;  %v793_v24 = vpop.f32.mrb[16].mxu1 }
 0x10f   : > { %v3924_v22 = vadd.f32 %v788_v16, %v640_v21  ;;  %v3190_v23 = vpop.f32.mrb[19].mxu0  ;;  %v3223_v25 = vpop.f32.mrb[17].mxu1 }
 0x110   : > { %v796_v26 = vpop.f32.mrb[18].mxu1  ;;  %v1048_v23 = vpop.permute.xlu1 %1047 }
 0x111   : > { %v3224_v27 = vpop.f32.mrb[19].mxu1 }
 0x114   : > { %v645_v28 = vpop.f32.mrb[20].mxu0 }
 0x115   : > { %v3926_v29 = vadd.f32 %v793_v24, %v645_v28  ;;  %v3193_v30 = vpop.f32.mrb[21].mxu0 }
 0x116   : > { %v648_v31 = vpop.f32.mrb[22].mxu0  ;;  %v801_v34 = vpop.f32.mrb[20].mxu1 }
 0x117   : > { %v3928_v32 = vadd.f32 %v796_v26, %v648_v31  ;;  %v3194_v33 = vpop.f32.mrb[23].mxu0  ;;  %v3227_v35 = vpop.f32.mrb[21].mxu1 }
 0x118   : > { %v804_v36 = vpop.f32.mrb[22].mxu1 }
 0x119   : > { %v3228_v37 = vpop.f32.mrb[23].mxu1 }
 0x11c   : > { %v653_v38 = vpop.f32.mrb[24].mxu0 }
 0x11d   : > { %v3930_v39 = vadd.f32 %v801_v34, %v653_v38  ;;  %v3197_v40 = vpop.f32.mrb[25].mxu0 }
 0x11e   : > { %v656_v41 = vpop.f32.mrb[26].mxu0 }
 0x11f   : > { %v3198_v42 = vpop.f32.mrb[27].mxu0 }
 0x120   : > { %v1053_v42 = vpop.permute.xlu0 %1052 }
 0x124   : > { %v753_v44 = vpop.f32.mrb[28].mxu0 }
 0x125   : > { %v754_v46 = vadd.f32 %v753_v44, %v3906_v43  ;;  %v3203_v47 = vpop.f32.mrb[29].mxu0 }
 0x126   : > { %v756_v48 = vpop.f32.mrb[30].mxu0 }
 0x127   : > { %v757_v49 = vadd.f32 %v756_v48, %v3908_v45  ;;  %v3204_v50 = vpop.f32.mrb[31].mxu0 }
 0x12c   : > { %v917_v51 = vpop.f32.mrb[32].mxu0 }
 0x12d   : > { %v971_v54 = vadd.f32 %v917_v51, %v754_v46  ;;  %v3233_v56 = vpop.f32.mrb[33].mxu0  ;;  %v1058_v46 = vpop.permute.xlu1 %1057 }
 0x12e   : > { %v920_v58 = vpop.f32.mrb[34].mxu0 }
 0x12f   : > { %v991_v59 = vadd.f32 %v3937_v53, %v971_v54  ;;  %v972_v60 = vadd.f32 %v920_v58, %v757_v49  ;;  %v3234_v61 = vpop.f32.mrb[35].mxu0 }
 0x131   : > { %v1004_v43 = vmax.f32 %v991_v59, 0.0  ;;  %v992_v63 = vadd.f32 %v3937_v53, %v972_v60 }
 0x133   : > { %v1095_v0 = vmul.f32 %v1033_v57, %v1004_v43  ;;  %v1005_v45 = vmax.f32 %v992_v63, 0.0 }
 0x134   : > { %v925_v4 = vpop.f32.mrb[36].mxu0 }
 0x135   : > { %v3072_v5 = vpack.c.bf16 %v1095_v0, %v1095_v0  ;;  %v1096_v6 = vmul.f32 %v1038_v3, %v1005_v45  ;;  %v973_v7 = vadd.f32 %v925_v4, %v3910_v52  ;;  %v3237_v8 = vpop.f32.mrb[37].mxu0  ;;  %v1063_v4 = vpop.permute.xlu0 %1062 }
 0x136   : > { %v928_v11 = vpop.f32.mrb[38].mxu0 }
 0x137   : > { %1167 = vst.msk [vmem:[#allocation2 + $0x4] sm:$0xf] %vm1108_vm1, %v3072_v5  ;;  %v3073_v13 = vpack.c.bf16 %v1096_v6, %v1096_v6  ;;  %v993_v14 = vadd.f32 %v3937_v53, %v973_v7  ;;  %v974_v15 = vadd.f32 %v928_v11, %v3912_v55  ;;  %v3238_v16 = vpop.f32.mrb[39].mxu0  ;;  %v1191_v55 = vld [vmem:[%s4492_s5] sm:$0x3] }
 0x138   : > { %v1390_v41 = vsel %vm1235_vm3, %v1191_v55, 0 }
 0x139   : > { %1168 = vst.msk [vmem:[#allocation2 + $0x8] sm:$0xf] %vm1108_vm1, %v3073_v13  ;;  %v1006_v17 = vmax.f32 %v993_v14, 0.0  ;;  %v994_v18 = vadd.f32 %v3937_v53, %v974_v15 }
 0x13b   : > { %v1097_v20 = vmul.f32 %v1043_v10, %v1006_v17  ;;  %v1007_v21 = vmax.f32 %v994_v18, 0.0  ;;  %v1068_v10 = vpop.permute.xlu1 %1067 }
 0x13c   : > { %v933_v52 = vpop.f32.mrb[40].mxu0 }
 0x13d   : > { %v3074_v24 = vpack.c.bf16 %v1097_v20, %v1097_v20  ;;  %v1098_v25 = vmul.f32 %v1048_v23, %v1007_v21  ;;  %v975_v26 = vadd.f32 %v933_v52, %v3914_v62  ;;  %v3241_v27 = vpop.f32.mrb[41].mxu0 }
 0x13e   : > { %v936_v28 = vpop.f32.mrb[42].mxu0  ;;  %v3954_v35 = vld [vmem:[#allocation2 + $0x4] sm:$0xf] }
 0x13f   : > { %1169 = vst.msk [vmem:[#allocation2 + $0xc] sm:$0xf] %vm1108_vm1, %v3074_v24  ;;  %v3075_v30 = vpack.c.bf16 %v1098_v25, %v1098_v25  ;;  %v995_v31 = vadd.f32 %v3937_v53, %v975_v26  ;;  %v976_v33 = vadd.f32 %v936_v28, %v3916_v2  ;;  %v3242_v34 = vpop.f32.mrb[43].mxu0 }
 0x140   : > { %v3956_v36 = vld [vmem:[#allocation2 + $0x8] sm:$0xf] }
 0x141   : > { %v3558_v62 = vld [vmem:[#allocation2 + $0x4] sm:$0xff]   ;;  %1170 = vst.msk [vmem:[#allocation2 + $0x10] sm:$0xf] %vm1108_vm1, %v3075_v30  ;;  %v1008_v37 = vmax.f32 %v995_v31, 0.0  ;;  %v996_v38 = vadd.f32 %v3937_v53, %v976_v33  ;;  %v2978_v40 = vcombine.low %v3954_v35, %v3956_v36 }
 0x142   : > { %v1510_v48 = vshll.u32 %v3558_v62, 16  ;;  %v1508_v5 = vshrl.u32 %v3558_v62, 16 }
 0x143   : > { %v1099_v44 = vmul.f32 %v1053_v42, %v1008_v37  ;;  %v1009_v2 = vmax.f32 %v996_v38, 0.0  ;;  %3262 = vmatmul.mubr.msk.bf16.vlgmr.msra.gmra.mrb[24].mxu1 %vm1219_vm5, %v2978_v40  ;;  %v1078_v38 = vpop.permute.xlu1 %1077 }
 0x144   : > { %3282 = vmatpush3.bf16.msra.mxu1 %v1390_v41  ;;  %v941_v47 = vpop.f32.mrb[44].mxu0  ;;  %3265 = vmatprep.mubr.msk.bf16.mxu1 %vm3637_vm0, %v3636_v1  ;;  %v1512_v0 = vrot.slane %v1510_v48, 1 }
 0x145   : > { %v3076_v49 = vpack.c.bf16 %v1099_v44, %v1099_v44  ;;  %v1100_v50 = vmul.f32 %v1058_v46, %v1009_v2  ;;  %v977_v51 = vadd.f32 %v941_v47, %v3918_v9  ;;  %v3245_v54 = vpop.f32.mrb[45].mxu0  ;;  %3325 = vmatprep.subr.bf16.mxu1 %v3636_v1 }
 0x146   : > { %v944_v56 = vpop.f32.mrb[46].mxu0  ;;  %v3971_v61 = vld [vmem:[#allocation2 + $0xc] sm:$0xf]  ;;  %v1513_v13 = vor.u32 %v1512_v0, %v1508_v5 }
 0x147   : > { %1171 = vst.msk [vmem:[#allocation2 + $0x14] sm:$0xf] %vm1108_vm1, %v3076_v49  ;;  %v3077_v57 = vpack.c.bf16 %v1100_v50, %v1100_v50  ;;  %v997_v58 = vadd.f32 %v3937_v53, %v977_v51  ;;  %v978_v59 = vadd.f32 %v944_v56, %v3920_v12  ;;  %v3246_v60 = vpop.f32.mrb[47].mxu0  ;;  %v3023_v12 = vld [vmem:[%s4492_s5 + $0x8] sm:$0x3] }
 0x148   : > { %v3973_v43 = vld [vmem:[#allocation2 + $0x10] sm:$0xf]  ;;  %v1872_v20 = vsel %vm1235_vm3, %v3023_v12, 0  ;;  %v1180_v51 = vld [vmem:[#allocation2] sm:$0x8]  ;;  %v1088_v12 = vpop.permute.xlu1 %1087 }
 0x149   : > { %v3559_v63 = vld [vmem:[#allocation2 + $0xc] sm:$0xff]   ;;  %1172 = vst.msk [vmem:[#allocation2 + $0x18] sm:$0xf] %vm1108_vm1, %v3077_v57  ;;  %v1010_v9 = vmax.f32 %v997_v58, 0.0  ;;  %v998_v45 = vadd.f32 %v3937_v53, %v978_v59  ;;  %v2979_v3 = vcombine.low %v3971_v61, %v3973_v43 }
 0x14a   : > { %v1515_v6 = vshll.u32 %v3559_v63, 16  ;;  %v1519_v33 = vshrl.u32 %v3559_v63, 16 }
 0x14b   : > { %v1101_v7 = vmul.f32 %v1063_v4, %v1010_v9  ;;  %v1011_v8 = vmax.f32 %v998_v45, 0.0  ;;  %3266 = vmatmul.mubr.msk.bf16.gmra.mrb[28].mxu1 %vm1219_vm5, %v2979_v3 }
 0x14c   : > { %v949_v11 = vpop.f32.mrb[48].mxu0  ;;  %v1517_v14 = vrot.slane %v1515_v6, 1  ;;  %3269 = vmatprep.mubr.msk.bf16.mxu1 %vm3637_vm0, %v3636_v1  ;;  %v2988_v6 = vcombine.low %v1180_v51, %v3954_v35 }
 0x14d   : > { %v3078_v15 = vpack.c.bf16 %v1101_v7, %v1101_v7  ;;  %v1102_v16 = vmul.f32 %v1068_v10, %v1011_v8  ;;  %v979_v17 = vadd.f32 %v949_v11, %v3922_v19  ;;  %v3249_v18 = vpop.f32.mrb[49].mxu0 }
 0x14e   : > { %v952_v21 = vpop.f32.mrb[50].mxu0  ;;  %v1518_v23 = vsel %vm1506_vm6, %v1513_v13, %v1517_v14  ;;  %v3988_v52 = vld [vmem:[#allocation2 + $0x14] sm:$0xf]  ;;  %v1521_v41 = vor.u32 %v1519_v33, %v1517_v14 }
 0x14f   : > { %1173 = vst.msk [vmem:[#allocation2 + $0x1c] sm:$0xf] %vm1108_vm1, %v3078_v15  ;;  %v3079_v24 = vpack.c.bf16 %v1102_v16, %v1102_v16  ;;  %v999_v25 = vadd.f32 %v3937_v53, %v979_v17  ;;  %v980_v26 = vadd.f32 %v952_v21, %v3924_v22  ;;  %v3250_v27 = vpop.f32.mrb[51].mxu0  ;;  %3306 = vmatmul.mubr.msk.bf16.vlgmr.msra.gmra.mrb[60].mxu0 %vm1219_vm5, %v1518_v23  ;;  %v1073_v22 = vpop.permute.xlu0 %1072 }
 0x150   : > { %v3994_v28 = vld [vmem:[#allocation2 + $0x18] sm:$0xf]  ;;  %3309 = vmatprep.mubr.msk.bf16.mxu0 %vm3637_vm0, %v3636_v1  ;;  %3348 = vmatpush3.bf16.msra.mxu0 %v1872_v20  ;;  %v1322_v20 = vshrl.u32 %v2988_v6, 16 }
 0x151   : > { %v3561_v19 = vld [vmem:[#allocation2 + $0x14] sm:$0xff]   ;;  %1174 = vst.msk [vmem:[#allocation2 + $0x20] sm:$0xf] %vm1108_vm1, %v3079_v24  ;;  %v1012_v55 = vmax.f32 %v999_v25, 0.0  ;;  %v1000_v30 = vadd.f32 %v3937_v53, %v980_v26  ;;  %v2980_v31 = vcombine.low %v3988_v52, %v3994_v28  ;;  %3391 = vmatprep.subr.bf16.mxu0 %v3636_v1  ;;  %v1325_v24 = vshll.u32 %v2988_v6, 16 }
 0x152   : > { %v1523_v34 = vshll.u32 %v3561_v19, 16  ;;  %v1527_v45 = vshrl.u32 %v3561_v19, 16  ;;  %v2990_v25 = vcombine.low %v3973_v43, %v3988_v52  ;;  %v1324_v43 = vrot.slane %v1322_v20, 3 }
 0x153   : > { %v1103_v62 = vmul.f32 %v1073_v22, %v1012_v55  ;;  %v1013_v37 = vmax.f32 %v1000_v30, 0.0  ;;  %3270 = vmatmul.mubr.msk.bf16.gmra.mrb[32].mxu1 %vm1219_vm5, %v2980_v31  ;;  %v1083_v9 = vpop.permute.xlu0 %1082  ;;  %v1327_v52 = vrot.slane %v1325_v24, 4 }
 0x154   : > { %v957_v40 = vpop.f32.mrb[52].mxu0  ;;  %v1525_v42 = vrot.slane %v1523_v34, 1  ;;  %3273 = vmatprep.mubr.msk.bf16.mxu1 %vm3637_vm0, %v3636_v1 }
 0x155   : > { %v3080_v44 = vpack.c.bf16 %v1103_v62, %v1103_v62  ;;  %v1104_v2 = vmul.f32 %v1078_v38, %v1013_v37  ;;  %v981_v46 = vadd.f32 %v957_v40, %v3926_v29  ;;  %v3253_v47 = vpop.f32.mrb[53].mxu0  ;;  %v3011_v38 = vld [vmem:[%s4492_s5 + $0x6] sm:$0x3]  ;;  %v1339_v40 = vshrl.u32 %v2990_v25, 16 }
 0x156   : > { %v960_v48 = vpop.f32.mrb[54].mxu0  ;;  %v1526_v49 = vsel %vm1506_vm6, %v1521_v41, %v1525_v42  ;;  %v4008_v50 = vld [vmem:[#allocation2 + $0x1c] sm:$0xf]  ;;  %v1529_v8 = vor.u32 %v1527_v45, %v1525_v42  ;;  %v1342_v41 = vshll.u32 %v2990_v25, 16 }
 0x157   : > { %1175 = vst.msk [vmem:[#allocation2 + $0x24] sm:$0xf] %vm1108_vm1, %v3080_v44  ;;  %v3081_v54 = vpack.c.bf16 %v1104_v2, %v1104_v2  ;;  %v1001_v56 = vadd.f32 %v3937_v53, %v981_v46  ;;  %v982_v57 = vadd.f32 %v960_v48, %v3928_v32  ;;  %3310 = vmatmul.mubr.msk.bf16.gmra.mrb[64].mxu0 %vm1219_vm5, %v1526_v49  ;;  %v3254_v58 = vpop.f32.mrb[55].mxu0  ;;  %v1093_v27 = vpop.permute.xlu0 %1092  ;;  %v1753_v48 = vsel %vm1235_vm3, %v3011_v38, 0 }
 0x158   : > { %v4014_v59 = vld [vmem:[#allocation2 + $0x20] sm:$0xf]  ;;  %3313 = vmatprep.mubr.msk.bf16.mxu0 %vm3637_vm0, %v3636_v1  ;;  %v2989_v32 = vcombine.low %v3956_v36, %v3971_v61  ;;  %v1328_v46 = vor.u32 %v1327_v52, %v1324_v43  ;;  %v1341_v49 = vrot.slane %v1339_v40, 3  ;;  %v1344_v51 = vrot.slane %v1342_v41, 4  ;;  %v1652_v43 = vld [vmem:[#allocation2 + $0x8] sm:$0xf] }
 0x159   : > { %v3563_v29 = vld [vmem:[#allocation2 + $0x1c] sm:$0xff]   ;;  %1176 = vst.msk [vmem:[#allocation2 + $0x28] sm:$0xf] %vm1108_vm1, %v3081_v54  ;;  %v1014_v60 = vmax.f32 %v1001_v56, 0.0  ;;  %v1002_v63 = vadd.f32 %v3937_v53, %v982_v57  ;;  %v2981_v0 = vcombine.low %v4008_v50, %v4014_v59  ;;  %v2991_v54 = vcombine.low %v3994_v28, %v4008_v50 }
 0x15a   : > { %v1531_v3 = vshll.u32 %v3563_v29, 16  ;;  %v1330_v61 = vshrl.u32 %v2989_v32, 16  ;;  %v1333_v15 = vshll.u32 %v2989_v32, 16  ;;  %v1535_v30 = vshrl.u32 %v3563_v29, 16  ;;  %v1838_v32 = vld [vmem:[#allocation2 + $0x8] sm:$0xe] }
 0x15b   : > { %v1105_v4 = vmul.f32 %v1083_v9, %v1014_v60  ;;  %v1015_v5 = vmax.f32 %v1002_v63, 0.0  ;;  %3274 = vmatmul.mubr.msk.bf16.gmra.mrb[36].mxu1 %vm1219_vm5, %v2981_v0  ;;  %v4059_v60 = vld [vmem:[#allocation2 + $0xc] sm:$0xf]  ;;  %v4061_v63 = vld [vmem:[#allocation2 + $0x10] sm:$0xff]   ;;  %v1345_v28 = vor.u32 %v1344_v51, %v1341_v49  ;;  %v1348_v50 = vshrl.u32 %v2991_v54, 16 }
 0x15c   : > { %v965_v7 = vpop.f32.mrb[56].mxu0  ;;  %v1533_v10 = vrot.slane %v1531_v3, 1  ;;  %3277 = vmatprep.mubr.msk.bf16.mxu1 %vm3637_vm0, %v3636_v1  ;;  %v1332_v19 = vrot.slane %v1330_v61, 3  ;;  %v1335_v55 = vrot.slane %v1333_v15, 4  ;;  %v1351_v9 = vshll.u32 %v2991_v54, 16 }
 0x15d   : > { %v3082_v11 = vpack.c.bf16 %v1105_v4, %v1105_v4  ;;  %v1106_v13 = vmul.f32 %v1088_v12, %v1015_v5  ;;  %v983_v14 = vadd.f32 %v965_v7, %v3930_v39  ;;  %v3257_v36 = vpop.f32.mrb[57].mxu0  ;;  %v4069_v45 = vcombine.low %v1838_v32, %v4059_v60  ;;  %v3037_v7 = vld [vmem:[%s4492_s5 + $0xc] sm:$0x3] }
 0x15e   : > { %v1534_v16 = vsel %vm1506_vm6, %v1529_v8, %v1533_v10  ;;  %v1189_v18 = vld [vmem:[#allocation2 + $0x24] sm:$0xf]  ;;  %v968_v21 = vpop.f32.mrb[58].mxu0  ;;  %v1537_v34 = vor.u32 %v1535_v30, %v1533_v10  ;;  %v1336_v44 = vor.u32 %v1335_v55, %v1332_v19  ;;  %v1846_v3 = vrot.slane %v4061_v63, 1 }
 0x15f   : > { %1177 = vst.msk [vmem:[#allocation2 + $0x2c] sm:$0xf] %vm1108_vm1, %v3082_v11  ;;  %v3083_v17 = vpack.c.bf16 %v1106_v13, %v1106_v13  ;;  %v1003_v35 = vadd.f32 %v3937_v53, %v983_v14  ;;  %3314 = vmatmul.mubr.msk.bf16.gmra.mrb[68].mxu0 %vm1219_vm5, %v1534_v16  ;;  %v3258_v22 = vpop.f32.mrb[59].mxu0  ;;  %v2992_v4 = vcombine.low %v4014_v59, %v1189_v18  ;;  %v1350_v6 = vrot.slane %v1348_v50, 3  ;;  %v4083_v13 = vld [vmem:[#allocation2 + $0x18] sm:$0xff]  }
 0x160   : > { %v4033_v23 = vld [vmem:[#allocation2 + $0x28] sm:$0xf]  ;;  %3317 = vmatprep.mubr.msk.bf16.mxu0 %vm3637_vm0, %v3636_v1  ;;  %v1337_v56 = vsel %vm1320_vm7, %v1328_v46, %v1336_v44  ;;  %v1346_v5 = vsel %vm1320_vm7, %v1336_v44, %v1345_v28  ;;  %v1353_v12 = vrot.slane %v1351_v9, 4  ;;  %v1845_v8 = vrot.slane %v4069_v45, 1  ;;  %v4098_v21 = vld [vmem:[#allocation2 + $0x14] sm:$0xff]  }
 0x161   : > { %v3566_v39 = vld [vmem:[#allocation2 + $0x24] sm:$0xff]   ;;  %1178 = vst.msk [vmem:[#allocation2 + $0x30] sm:$0xf] %vm1108_vm1, %v3083_v17  ;;  %v1016_v26 = vmax.f32 %v1003_v35, 0.0  ;;  %v2982_v53 = vcombine.low %v1189_v18, %v4033_v23  ;;  %v2208_v10 = vsel %vm1235_vm3, %v3037_v7, 0  ;;  %v1357_v14 = vshrl.u32 %v2992_v4, 16 }
 0x162   : > { %v1539_v31 = vshll.u32 %v3566_v39, 16  ;;  %v1543_v57 = vshrl.u32 %v3566_v39, 16  ;;  %v1847_v59 = vsel %vm1844_vm8, %v1845_v8, %v1846_v3  ;;  %v1354_v11 = vor.u32 %v1353_v12, %v1350_v6  ;;  %v4096_v18 = vld [vmem:[#allocation2 + $0x20] sm:$0xff]  }
 0x163   : > { %v1107_v33 = vmul.f32 %v1093_v27, %v1016_v26  ;;  %3278 = vmatmul.mubr.msk.bf16.gmra.mrb[40].mxu1 %vm1219_vm5, %v2982_v53  ;;  %v1360_v36 = vshll.u32 %v2992_v4, 16  ;;  %v2993_v61 = vcombine.low %v4033_v23, %v4033_v23  ;;  %v1848_v16 = vrot.slane %v4083_v13, 1  ;;  %v4100_v39 = vld [vmem:[#allocation2 + $0x1c] sm:$0xff]   ;;  %v4103_v26 = vld [vmem:[#allocation2 + $0x24] sm:$0xff]  }
 0x164   : > { %v1541_v62 = vrot.slane %v1539_v31, 1  ;;  %3283 = vmatprep.mubr.msk.bf16.mxu1 %vm3637_vm0, %v3636_v1  ;;  %v1355_v15 = vsel %vm1320_vm7, %v1345_v28, %v1354_v11  ;;  %v1359_v17 = vrot.slane %v1357_v14, 3  ;;  %v1850_v19 = vrot.slane %v4096_v18, 1  ;;  %v2098_v28 = vld [vmem:[#allocation2 + $0xc] sm:$0xe] }
 0x165   : > { %v3084_v37 = vpack.c.bf16 %v1107_v33, %v1107_v33  ;;  %v1362_v35 = vrot.slane %v1360_v36, 4  ;;  %v1366_v20 = vshrl.u32 %v2993_v61, 16  ;;  %v1849_v23 = vsel %vm1844_vm8, %v1846_v3, %v1848_v16 }
 0x166   : > { %v1542_v42 = vsel %vm1506_vm6, %v1537_v34, %v1541_v62  ;;  %v3567_v2 = vld [vmem:[#allocation2 + $0x2c] ss:$0 sps:$4 sm:$0x11]   ;;  %v1545_v29 = vor.u32 %v1543_v57, %v1541_v62  ;;  %v1369_v25 = vshll.u32 %v2993_v61, 16  ;;  %v2301_v30 = vrot.slane %v4098_v21, 2 }
 0x167   : > { %1179 = vst.msk [vmem:[#allocation2 + $0x34] sm:$0x3] %vm1112_vm4, %v3084_v37  ;;  %3318 = vmatmul.mubr.msk.bf16.gmra.mrb[72].mxu0 %vm1219_vm5, %v1542_v42  ;;  %v1547_v47 = vshll.u32 %v3567_v2, 16  ;;  %v1363_v24 = vor.u32 %v1362_v35, %v1359_v17  ;;  %v1368_v55 = vrot.slane %v1366_v20, 3  ;;  %v2303_v31 = vrot.slane %v4100_v39, 2  ;;  %v4135_v2 = vld [vmem:[#allocation2 + $0x28] sm:$0xff]  }
 0x168   : > { %3321 = vmatprep.mubr.msk.bf16.mxu0 %vm3637_vm0, %v3636_v1  ;;  %v4105_v53 = vld [vmem:[#allocation2 + $0x2c] sm:$0xff]   ;;  %v1371_v33 = vrot.slane %v1369_v25, 4  ;;  %v2305_v34 = vrot.slane %v4103_v26, 2  ;;  %v3012_v37 = vcombine.low %v1652_v43, %v4059_v60  ;;  %v1851_v42 = vsel %vm1844_vm8, %v1848_v16, %v1850_v19 }
 0x169   : > { %v1549_v58 = vrot.slane %v1547_v47, 1  ;;  %v1364_v22 = vsel %vm1320_vm7, %v1354_v11, %v1363_v24  ;;  %v2307_v62 = vrot.slane %v4105_v53, 2  ;;  %v4122_v52 = vsel %vm2299_vm9, %v2301_v30, %v2303_v31  ;;  %v4152_v57 = vld [vmem:[#allocation2 + $0x10] sm:$0xf] }
 0x16a   : > { %v4128_v38 = vsel %vm2299_vm9, %v2303_v31, %v2305_v34  ;;  %v1372_v44 = vor.u32 %v1371_v33, %v1368_v55  ;;  %v1696_v47 = vshll.u32 %v3012_v37, 16  ;;  %v1852_v49 = vrot.slane %v4135_v2, 1  ;;  %v3056_v25 = vld [vmem:[%s4492_s5 + $0x10] sm:$0x3] }
 0x16b   : > { %3284 = vmatmul.mubr.msk.bf16.vlgmr.msra.gmra.mrb[44].mxu1 %vm1219_vm5, %v1337_v56  ;;  %v1550_v0 = vsel %vm1506_vm6, %v1545_v29, %v1549_v58  ;;  %v4131_v40 = vsel %vm2299_vm9, %v2305_v34, %v2307_v62  ;;  %v1701_v51 = vshll.u32 %v4061_v63, 16  ;;  %v3030_v56 = vld [vmem:[%s4492_s5 + $0xa] sm:$0x3]  ;;  %v1694_v29 = vshrl.u32 %v3012_v37, 16 }
 0x16c   : > { %3326 = vmatpush3.bf16.msra.mxu1 %v1753_v48  ;;  %3287 = vmatprep.mubr.msk.bf16.mxu1 %vm3637_vm0, %v3636_v1  ;;  %v1373_v48 = vsel %vm1320_vm7, %v1363_v24, %v1372_v44  ;;  %v1698_v54 = vrot.slane %v1696_v47, 1  ;;  %v1853_v58 = vsel %vm1844_vm8, %v1850_v19, %v1852_v49  ;;  %v3038_v9 = vcombine.low %v2098_v28, %v4152_v57 }
 0x16d   : > { %3369 = vmatprep.subr.bf16.mxu1 %v3636_v1  ;;  %v1703_v60 = vrot.slane %v1701_v51, 1  ;;  %v2013_v32 = vsel %vm1235_vm3, %v3030_v56, 0  ;;  %v1709_v3 = vshll.u32 %v4083_v13, 16  ;;  %v2148_v6 = vshrl.u32 %v4098_v21, 16 }
 0x16e   : > { %v4110_v27 = vld [vmem:[#allocation2 + $0x34] ss:$0 sps:$4 sm:$0x33]   ;;  %v1699_v50 = vor.u32 %v1698_v54, %v1694_v29  ;;  %v2151_v12 = vshll.u32 %v4098_v21, 16  ;;  %v2140_v7 = vshrl.u32 %v3038_v9, 16  ;;  %v2143_v8 = vshll.u32 %v3038_v9, 16 }
 0x16f   : > { %3322 = vmatmul.mubr.msk.bf16.gmra.mrb[76].mxu0 %vm1219_vm5, %v1550_v0  ;;  %v2309_v41 = vrot.slane %v4110_v27, 2  ;;  %v4157_v0 = vld [vmem:[#allocation2 + $0x30] ss:$0 sps:$4 sm:$0x11]   ;;  %v2150_v14 = vrot.slane %v2148_v6, 1  ;;  %v1717_v20 = vshll.u32 %v4096_v18, 16 }
 0x170   : > { %3349 = vmatprep.mubr.msk.bf16.mxu0 %vm3637_vm0, %v3636_v1  ;;  %v1704_v4 = vsel %vm1506_vm6, %v1699_v50, %v1703_v60  ;;  %v2153_v36 = vrot.slane %v2151_v12, 2  ;;  %v2145_v16 = vrot.slane %v2143_v8, 2  ;;  %v2160_v24 = vshll.u32 %v4100_v39, 16 }
 0x171   : > { %v4138_v46 = vsel %vm2299_vm9, %v2307_v62, %v2309_v41  ;;  %v1713_v55 = vshrl.u32 %v4083_v13, 16  ;;  %v2468_v31 = vsel %vm1235_vm3, %v3056_v25, 0  ;;  %v1719_v33 = vrot.slane %v1717_v20, 1 }
 0x172   : > { %v2154_v35 = vor.u32 %v2153_v36, %v2150_v14  ;;  %v2162_v62 = vrot.slane %v2160_v24, 2  ;;  %v1725_v37 = vshll.u32 %v4135_v2, 16  ;;  %v2166_v44 = vshrl.u32 %v4103_v26, 16 }
 0x173   : > { %3288 = vmatmul.mubr.msk.bf16.gmra.mrb[48].mxu1 %vm1219_vm5, %v1346_v5  ;;  %v1854_v5 = vrot.slane %v4157_v0, 1  ;;  %v2169_v47 = vshll.u32 %v4103_v26, 16  ;;  %v2175_v9 = vshrl.u32 %v4105_v53, 16  ;;  %v1968_v14 = vshll.u32 %v4069_v45, 16 }
 0x174   : > { %3291 = vmatprep.mubr.msk.bf16.mxu1 %vm3637_vm0, %v3636_v1  ;;  %v1727_v54 = vrot.slane %v1725_v37, 1  ;;  %v2168_v56 = vrot.slane %v2166_v44, 1  ;;  %v2428_v13 = vrot.slane %v2151_v12, 3 }
 0x175   : > { %v1855_v11 = vsel %vm1844_vm8, %v1852_v49, %v1854_v5  ;;  %v2177_v8 = vrot.slane %v2175_v9, 1 }
 0x177   : > { %3350 = vmatmul.mubr.msk.bf16.vlgmr.msra.gmra.mrb[80].mxu0 %vm1219_vm5, %v1847_v59  ;;  %v1711_v59 = vrot.slane %v1709_v3, 1 }
 0x178   : > { %3353 = vmatprep.mubr.msk.bf16.mxu0 %vm3637_vm0, %v3636_v1  ;;  %3392 = vmatpush3.bf16.msra.mxu0 %v2208_v10  ;;  %v1705_v10 = vshrl.u32 %v4061_v63, 16 }
 0x179   : > { %3435 = vmatprep.subr.bf16.mxu0 %v3636_v1  ;;  %v1715_v43 = vor.u32 %v1713_v55, %v1711_v59 }
 0x17a   : > { %v1707_v61 = vor.u32 %v1705_v10, %v1703_v60  ;;  %v1733_v60 = vshll.u32 %v4157_v0, 16  ;;  %v1972_v36 = vrot.slane %v1705_v10, 1 }
 0x17b   : > { %3292 = vmatmul.mubr.msk.bf16.gmra.mrb[52].mxu1 %vm1219_vm5, %v1355_v15  ;;  %v2142_v15 = vrot.slane %v2140_v7, 1  ;;  %v1720_v41 = vsel %vm1506_vm6, %v1715_v43, %v1719_v33 }
 0x17c   : > { %3295 = vmatprep.mubr.msk.bf16.mxu1 %vm3637_vm0, %v3636_v1  ;;  %v1712_v17 = vsel %vm1506_vm6, %v1707_v61, %v1711_v59  ;;  %v1735_v7 = vrot.slane %v1733_v60, 1 }
 0x17d   : > { %v2146_v19 = vor.u32 %v2145_v16, %v2142_v15  ;;  %v1973_v16 = vrot.slane %v1701_v51, 2 }
 0x17f   : > { %3354 = vmatmul.mubr.msk.bf16.gmra.mrb[84].mxu0 %vm1219_vm5, %v1849_v23  ;;  %v2157_v23 = vshrl.u32 %v4100_v39, 16  ;;  %v1974_v10 = vor.u32 %v1973_v16, %v1972_v36  ;;  %v2435_v39 = vrot.slane %v2166_v44, 2  ;;  %v3583_v16 = vld [vmem:[#allocation2 + $0x34] ss:$0 sps:$4 sm:$0x77]  }
 0x180   : > { %3357 = vmatprep.mubr.msk.bf16.mxu0 %vm3637_vm0, %v3636_v1 }
 0x181   : > { %v2159_v34 = vrot.slane %v2157_v23, 1 }
 0x183   : > { %3296 = vmatmul.mubr.msk.bf16.gmra.mrb[56].mxu1 %vm1219_vm5, %v1364_v22  ;;  %v2155_v22 = vsel %vm1963_vm10, %v2146_v19, %v2154_v35  ;;  %v1970_v19 = vrot.slane %v1968_v14, 2 }
 0x184   : > { %3299 = vmatprep.mubr.msk.bf16.mxu1 %vm3637_vm0, %v3636_v1 }
 0x187   : > { %3358 = vmatmul.mubr.msk.bf16.gmra.mrb[88].mxu0 %vm1219_vm5, %v1851_v42  ;;  %v2163_v42 = vor.u32 %v2162_v62, %v2159_v34 }
 0x188   : > { %3361 = vmatprep.mubr.msk.bf16.mxu0 %vm3637_vm0, %v3636_v1 }
 0x189   : > { %v2164_v49 = vsel %vm1963_vm10, %v2154_v35, %v2163_v42  ;;  %v2187_v35 = vshll.u32 %v4110_v27, 16 }
 0x18b   : > { %3300 = vmatmul.mubr.msk.bf16.gmra.mrb[60].mxu1 %vm1219_vm5, %v1373_v48  ;;  %v1721_v48 = vshrl.u32 %v4096_v18, 16  ;;  %v2189_v51 = vrot.slane %v2187_v35, 2 }
 0x18c   : > { %3327 = vmatprep.mubr.msk.bf16.mxu1 %vm3637_vm0, %v3636_v1 }
 0x18d   : > { %v1723_v29 = vor.u32 %v1721_v48, %v1719_v33 }
 0x18f   : > { %3362 = vmatmul.mubr.msk.bf16.gmra.mrb[92].mxu0 %vm1219_vm5, %v1853_v58  ;;  %v2171_v58 = vrot.slane %v2169_v47, 2  ;;  %v1728_v28 = vsel %vm1506_vm6, %v1723_v29, %v1727_v54 }
 0x190   : > { %3365 = vmatprep.mubr.msk.bf16.mxu0 %vm3637_vm0, %v3636_v1 }
 0x191   : > { %v2172_v50 = vor.u32 %v2171_v58, %v2168_v56 }
 0x193   : > { %3328 = vmatmul.mubr.msk.bf16.vlgmr.msra.gmra.mrb[64].mxu1 %vm1219_vm5, %v1704_v4  ;;  %v1729_v4 = vshrl.u32 %v4135_v2, 16  ;;  %v2173_v0 = vsel %vm1963_vm10, %v2163_v42, %v2172_v50  ;;  %v1977_v42 = vrot.slane %v1709_v3, 2 }
 0x194   : > { %3370 = vmatpush3.bf16.msra.mxu1 %v2013_v32  ;;  %3331 = vmatprep.mubr.msk.bf16.mxu1 %vm3637_vm0, %v3636_v1  ;;  %v2178_v32 = vshll.u32 %v4105_v53, 16 }
 0x195   : > { %3413 = vmatprep.subr.bf16.mxu1 %v3636_v1  ;;  %v1731_v5 = vor.u32 %v1729_v4, %v1727_v54 }
 0x196   : > { %v2180_v59 = vrot.slane %v2178_v32, 2 }
 0x197   : > { %3366 = vmatmul.mubr.msk.bf16.gmra.mrb[96].mxu0 %vm1219_vm5, %v1855_v11  ;;  %v1965_v11 = vshrl.u32 %v4069_v45, 16  ;;  %v1736_v61 = vsel %vm1506_vm6, %v1731_v5, %v1735_v7  ;;  %v2431_v7 = vrot.slane %v2157_v23, 2  ;;  %v2436_v23 = vrot.slane %v2169_v47, 3 }
 0x198   : > { %3393 = vmatprep.mubr.msk.bf16.mxu0 %vm3637_vm0, %v3636_v1  ;;  %v2181_v15 = vor.u32 %v2180_v59, %v2177_v8  ;;  %v1985_v8 = vrot.slane %v1725_v37, 2  ;;  %v3582_v59 = vld [vmem:[#allocation2 + $0x30] ss:$0 sps:$4 sm:$0x33]   ;;  %v2439_v47 = vrot.slane %v2175_v9, 2 }
 0x199   : > { %v1967_v25 = vrot.slane %v1965_v11, 1  ;;  %v1989_v14 = vshrl.u32 %v3582_v59, 16  ;;  %v2437_v37 = vor.u32 %v2436_v23, %v2435_v39 }
 0x19a   : > { %v2182_v45 = vsel %vm1963_vm10, %v2172_v50, %v2181_v15  ;;  %v1981_v50 = vrot.slane %v1717_v20, 2 }
 0x19b   : > { %3332 = vmatmul.mubr.msk.bf16.gmra.mrb[68].mxu1 %vm1219_vm5, %v1712_v17  ;;  %v2184_v17 = vshrl.u32 %v4110_v27, 16  ;;  %v1971_v33 = vor.u32 %v1970_v19, %v1967_v25  ;;  %v1991_v36 = vrot.slane %v1989_v14, 1  ;;  %v2444_v25 = vshrl.u32 %v3583_v16, 16 }
 0x19c   : > { %3335 = vmatprep.mubr.msk.bf16.mxu1 %vm3637_vm0, %v3636_v1  ;;  %v2447_v19 = vshll.u32 %v3583_v16, 16 }
 0x19d   : > { %v2186_v63 = vrot.slane %v2184_v17, 1  ;;  %v1975_v62 = vsel %vm1963_vm10, %v1971_v33, %v1974_v10  ;;  %v2446_v53 = vrot.slane %v2444_v25, 2 }
 0x19f   : > { %3394 = vmatmul.mubr.msk.bf16.vlgmr.msra.gmra.mrb[100].mxu0 %vm1219_vm5, %v2155_v22  ;;  %v2293_v22 = vld [vmem:[#allocation2 + $0xc] sm:$0xc]  ;;  %v2190_v43 = vor.u32 %v2189_v51, %v2186_v63 }
 0x1a0   : > { %3397 = vmatprep.mubr.msk.bf16.mxu0 %vm3637_vm0, %v3636_v1  ;;  %3436 = vmatpush3.bf16.msra.mxu0 %v2468_v31  ;;  %v3049_v31 = vld [vmem:[%s4492_s5 + $0xe] sm:$0x3]  ;;  %v4262_v27 = vcombine.low %v2293_v22, %v4152_v57 }
 0x1a1   : > { %v2327_v34 = vsel %vm1235_vm3, %v3049_v31, 0  ;;  %v2191_v54 = vsel %vm1963_vm10, %v2181_v15, %v2190_v43  ;;  %v2440_v15 = vrot.slane %v2178_v32, 3  ;;  %v2449_v32 = vrot.slane %v2447_v19, 3 }
 0x1a2   : > { %v2420_v57 = vshrl.u32 %v4262_v27, 16 }
 0x1a3   : > { %3336 = vmatmul.mubr.msk.bf16.gmra.mrb[72].mxu1 %vm1219_vm5, %v1720_v41  ;;  %v1976_v41 = vrot.slane %v1713_v55, 1  ;;  %v2427_v55 = vrot.slane %v2148_v6, 2  ;;  %v2441_v35 = vor.u32 %v2440_v15, %v2439_v47  ;;  %v2450_v31 = vor.u32 %v2449_v32, %v2446_v53 }
 0x1a4   : > { %3339 = vmatprep.mubr.msk.bf16.mxu1 %vm3637_vm0, %v3636_v1  ;;  %v2422_v3 = vrot.slane %v2420_v57, 2 }
 0x1a5   : > { %v1978_v56 = vor.u32 %v1977_v42, %v1976_v41  ;;  %v2429_v60 = vor.u32 %v2428_v13, %v2427_v55  ;;  %v2442_v9 = vsel %vm2418_vm11, %v2437_v37, %v2441_v35  ;;  %v2451_v63 = vsel %vm2418_vm11, %v2441_v35, %v2450_v31 }
 0x1a7   : > { %3398 = vmatmul.mubr.msk.bf16.gmra.mrb[104].mxu0 %vm1219_vm5, %v2164_v49  ;;  %v2423_v49 = vshll.u32 %v4262_v27, 16  ;;  %v1979_v29 = vsel %vm1963_vm10, %v1974_v10, %v1978_v56 }
 0x1a8   : > { %3401 = vmatprep.mubr.msk.bf16.mxu0 %vm3637_vm0, %v3636_v1 }
 0x1a9   : > { %v2425_v58 = vrot.slane %v2423_v49, 3 }
 0x1ab   : > { %3340 = vmatmul.mubr.msk.bf16.gmra.mrb[76].mxu1 %vm1219_vm5, %v1728_v28  ;;  %v1980_v28 = vrot.slane %v1721_v48, 1  ;;  %v2426_v6 = vor.u32 %v2425_v58, %v2422_v3  ;;  %v1984_v48 = vrot.slane %v1729_v4, 1  ;;  %v1992_v4 = vshll.u32 %v3582_v59, 16 }
 0x1ac   : > { %3343 = vmatprep.mubr.msk.bf16.mxu1 %vm3637_vm0, %v3636_v1 }
 0x1ad   : > { %v2430_v12 = vsel %vm2418_vm11, %v2426_v6, %v2429_v60  ;;  %v1982_v5 = vor.u32 %v1981_v50, %v1980_v28  ;;  %v1986_v11 = vor.u32 %v1985_v8, %v1984_v48 }
 0x1af   : > { %3402 = vmatmul.mubr.msk.bf16.gmra.mrb[108].mxu0 %vm1219_vm5, %v2173_v0  ;;  %v2432_v0 = vrot.slane %v2160_v24, 3  ;;  %v1983_v18 = vsel %vm1963_vm10, %v1978_v56, %v1982_v5  ;;  %v1987_v2 = vsel %vm1963_vm10, %v1982_v5, %v1986_v11 }
 0x1b0   : > { %3405 = vmatprep.mubr.msk.bf16.mxu0 %vm3637_vm0, %v3636_v1 }
 0x1b1   : > { %v2433_v20 = vor.u32 %v2432_v0, %v2431_v7 }
 0x1b3   : > { %3344 = vmatmul.mubr.msk.bf16.gmra.mrb[80].mxu1 %vm1219_vm5, %v1736_v61  ;;  %v2434_v24 = vsel %vm2418_vm11, %v2429_v60, %v2433_v20  ;;  %v1994_v61 = vrot.slane %v1992_v4, 2  ;;  %v2438_v26 = vsel %vm2418_vm11, %v2433_v20, %v2437_v37 }
 0x1b4   : > { %3371 = vmatprep.mubr.msk.bf16.mxu1 %vm3637_vm0, %v3636_v1 }
 0x1b5   : > { %v1995_v44 = vor.u32 %v1994_v61, %v1991_v36 }
 0x1b7   : > { %3406 = vmatmul.mubr.msk.bf16.gmra.mrb[112].mxu0 %vm1219_vm5, %v2182_v45  ;;  %v1996_v17 = vsel %vm1963_vm10, %v1986_v11, %v1995_v44  ;;  %v2300_v45 = vrot.slane %v4262_v27, 2 }
 0x1b8   : > { %3409 = vmatprep.mubr.msk.bf16.mxu0 %vm3637_vm0, %v3636_v1 }
 0x1b9   : > { %v2302_v10 = vsel %vm2299_vm9, %v2300_v45, %v2301_v30 }
 0x1bb   : > { %3372 = vmatmul.mubr.msk.bf16.vlgmr.msra.gmra.mrb[84].mxu1 %vm1219_vm5, %v1975_v62 }
 0x1bc   : > { %3414 = vmatpush3.bf16.msra.mxu1 %v2327_v34  ;;  %3375 = vmatprep.mubr.msk.bf16.mxu1 %vm3637_vm0, %v3636_v1 }
 0x1bd   : > { %3457 = vmatprep.subr.bf16.mxu1 %v3636_v1 }
 0x1bf   : > { %3410 = vmatmul.mubr.msk.bf16.gmra.mrb[116].mxu0 %vm1219_vm5, %v2191_v54 }
 0x1c0   : > { %3437 = vmatprep.mubr.msk.bf16.mxu0 %vm3637_vm0, %v3636_v1 }
 0x1c3   : > { %3376 = vmatmul.mubr.msk.bf16.gmra.mrb[88].mxu1 %vm1219_vm5, %v1979_v29 }
 0x1c4   : > { %3379 = vmatprep.mubr.msk.bf16.mxu1 %vm3637_vm0, %v3636_v1 }
 0x1c7   : > { %3438 = vmatmul.mubr.msk.bf16.vlgmr.msra.gmra.mrb[120].mxu0 %vm1219_vm5, %v2430_v12 }
 0x1c8   : > { %3441 = vmatprep.mubr.msk.bf16.mxu0 %vm3637_vm0, %v3636_v1 }
 0x1cb   : > { %3380 = vmatmul.mubr.msk.bf16.gmra.mrb[92].mxu1 %vm1219_vm5, %v1983_v18 }
 0x1cc   : > { %3383 = vmatprep.mubr.msk.bf16.mxu1 %vm3637_vm0, %v3636_v1 }
 0x1cf   : > { %3442 = vmatmul.mubr.msk.bf16.gmra.mrb[124].mxu0 %vm1219_vm5, %v2434_v24 }
 0x1d0   : > { %3445 = vmatprep.mubr.msk.bf16.mxu0 %vm3637_vm0, %v3636_v1 }
 0x1d3   : > { %3384 = vmatmul.mubr.msk.bf16.gmra.mrb[96].mxu1 %vm1219_vm5, %v1987_v2 }
 0x1d4   : > { %3387 = vmatprep.mubr.msk.bf16.mxu1 %vm3637_vm0, %v3636_v1 }
 0x1d7   : > { %3446 = vmatmul.mubr.msk.bf16.gmra.mrb[128].mxu0 %vm1219_vm5, %v2438_v26 }
 0x1d8   : > { %3449 = vmatprep.mubr.msk.bf16.mxu0 %vm3637_vm0, %v3636_v1 }
 0x1db   : > { %3388 = vmatmul.mubr.msk.bf16.gmra.mrb[100].mxu1 %vm1219_vm5, %v1996_v17 }
 0x1dc   : > { %3415 = vmatprep.mubr.msk.bf16.mxu1 %vm3637_vm0, %v3636_v1 }
 0x1df   : > { %3450 = vmatmul.mubr.msk.bf16.gmra.mrb[132].mxu0 %vm1219_vm5, %v2442_v9 }
 0x1e0   : > { %3453 = vmatprep.mubr.msk.bf16.mxu0 %vm3637_vm0, %v3636_v1 }
 0x1e3   : > { %3416 = vmatmul.mubr.msk.bf16.vlgmr.msra.gmra.mrb[104].mxu1 %vm1219_vm5, %v2302_v10 }
 0x1e4   : > { %3419 = vmatprep.mubr.msk.bf16.mxu1 %vm3637_vm0, %v3636_v1 }
 0x1e7   : > { %3454 = vmatmul.mubr.msk.bf16.gmra.mrb[136].mxu0 %vm1219_vm5, %v2451_v63 }
 0x1eb   : > { %3420 = vmatmul.mubr.msk.bf16.gmra.mrb[108].mxu1 %vm1219_vm5, %v4122_v52 }
 0x1ec   : > { %3423 = vmatprep.mubr.msk.bf16.mxu1 %vm3637_vm0, %v3636_v1 }
 0x1f3   : > { %3424 = vmatmul.mubr.msk.bf16.gmra.mrb[112].mxu1 %vm1219_vm5, %v4128_v38  ;;  %v2585_v38 = vld [vmem:[%s4493_s6] sm:$0x3] }
 0x1f4   : > { %3427 = vmatprep.mubr.msk.bf16.mxu1 %vm3637_vm0, %v3636_v1  ;;  %v2620_v22 = vsel %vm1235_vm3, %v2585_v38, 0 }
 0x1f5   : > { %3458 = vmatpush3.bf16.msra.mxu1 %v2620_v22 }
 0x1fb   : > { %3428 = vmatmul.mubr.msk.bf16.gmra.mrb[116].mxu1 %vm1219_vm5, %v4131_v40 }
 0x1fc   : > { %3431 = vmatprep.mubr.msk.bf16.mxu1 %vm3637_vm0, %v3636_v1 }
 0x203   : > { %3432 = vmatmul.mubr.msk.bf16.gmra.mrb[120].mxu1 %vm1219_vm5, %v4138_v46 }
 0x204   : > { %3459 = vmatprep.mubr.msk.bf16.mxu1 %vm3637_vm0, %v3636_v1 }
 0x216   : > { %v1273_v21 = vpop.f32.mrb[24].mxu1 }
 0x217   : > { %v3263_v30 = vpop.f32.mrb[25].mxu1 }
 0x218   : > { %v1276_v52 = vpop.f32.mrb[26].mxu1 }
 0x219   : > { %v3264_v51 = vpop.f32.mrb[27].mxu1 }
 0x21e   : > { %v1281_v40 = vpop.f32.mrb[28].mxu1 }
 0x21f   : > { %v3267_v27 = vpop.f32.mrb[29].mxu1 }
 0x220   : > { %v1284_v33 = vpop.f32.mrb[30].mxu1 }
 0x221   : > { %v3268_v34 = vpop.f32.mrb[31].mxu1 }
 0x222   : > { %v1603_v62 = vpop.f32.mrb[60].mxu0 }
 0x223   : > { %v3307_v46 = vpop.f32.mrb[61].mxu0 }
 0x224   : > { %v1606_v43 = vpop.f32.mrb[62].mxu0 }
 0x225   : > { %v3308_v41 = vpop.f32.mrb[63].mxu0 }
 0x226   : > { %v1289_v42 = vpop.f32.mrb[32].mxu1 }
 0x227   : > { %v3271_v57 = vpop.f32.mrb[33].mxu1 }
 0x228   : > { %v1292_v49 = vpop.f32.mrb[34].mxu1 }
 0x229   : > { %v3272_v54 = vpop.f32.mrb[35].mxu1 }
 0x22a   : > { %v1611_v56 = vpop.f32.mrb[64].mxu0 }
 0x22b   : > { %v3311_v55 = vpop.f32.mrb[65].mxu0 }
 0x22c   : > { %v1614_v13 = vpop.f32.mrb[66].mxu0 }
 0x22d   : > { %v3312_v3 = vpop.f32.mrb[67].mxu0 }
 0x22e   : > { %v1297_v58 = vpop.f32.mrb[36].mxu1 }
 0x22f   : > { %v3275_v29 = vpop.f32.mrb[37].mxu1 }
 0x230   : > { %v1300_v60 = vpop.f32.mrb[38].mxu1 }
 0x231   : > { %v3276_v28 = vpop.f32.mrb[39].mxu1 }
 0x232   : > { %v1619_v50 = vpop.f32.mrb[68].mxu0 }
 0x233   : > { %v3315_v6 = vpop.f32.mrb[69].mxu0 }
 0x234   : > { %v1622_v12 = vpop.f32.mrb[70].mxu0 }
 0x235   : > { %v3316_v5 = vpop.f32.mrb[71].mxu0 }
 0x236   : > { %v1305_v7 = vpop.f32.mrb[40].mxu1 }
 0x237   : > { %v3279_v0 = vpop.f32.mrb[41].mxu1 }
 0x238   : > { %v1308_v18 = vpop.f32.mrb[42].mxu1 }
 0x239   : > { %v3280_v20 = vpop.f32.mrb[43].mxu1 }
 0x23a   : > { %v1627_v48 = vpop.f32.mrb[72].mxu0 }
 0x23b   : > { %v3319_v8 = vpop.f32.mrb[73].mxu0 }
 0x23c   : > { %v1630_v59 = vpop.f32.mrb[74].mxu0 }
 0x23d   : > { %v3320_v39 = vpop.f32.mrb[75].mxu0 }
 0x23e   : > { %v1426_v23 = vpop.f32.mrb[44].mxu1 }
 0x23f   : > { %v1427_v24 = vadd.f32 %v1426_v23, %v1273_v21  ;;  %v3285_v11 = vpop.f32.mrb[45].mxu1 }
 0x240   : > { %v1429_v14 = vpop.f32.mrb[46].mxu1 }
 0x241   : > { %v1430_v4 = vadd.f32 %v1429_v14, %v1276_v52  ;;  %v3286_v2 = vpop.f32.mrb[47].mxu1  ;;  %v1642_v37 = vadd.f32 %v1603_v62, %v1427_v24 }
 0x242   : > { %v1635_v36 = vpop.f32.mrb[76].mxu0 }
 0x243   : > { %v3323_v61 = vpop.f32.mrb[77].mxu0  ;;  %v1643_v26 = vadd.f32 %v1606_v43, %v1430_v4 }
 0x244   : > { %v1638_v44 = vpop.f32.mrb[78].mxu0 }
 0x245   : > { %v3324_v47 = vpop.f32.mrb[79].mxu0 }
 0x246   : > { %v1434_v15 = vpop.f32.mrb[48].mxu1 }
 0x247   : > { %v1435_v16 = vadd.f32 %v1434_v15, %v1281_v40  ;;  %v3289_v17 = vpop.f32.mrb[49].mxu1 }
 0x248   : > { %v1437_v35 = vpop.f32.mrb[50].mxu1 }
 0x249   : > { %v1438_v25 = vadd.f32 %v1437_v35, %v1284_v33  ;;  %v3290_v19 = vpop.f32.mrb[51].mxu1  ;;  %v1644_v9 = vadd.f32 %v1611_v56, %v1435_v16 }
 0x24a   : > { %v1908_v53 = vpop.f32.mrb[80].mxu0 }
 0x24b   : > { %v3351_v32 = vpop.f32.mrb[81].mxu0  ;;  %v1645_v45 = vadd.f32 %v1614_v13, %v1438_v25 }
 0x24c   : > { %v1911_v10 = vpop.f32.mrb[82].mxu0 }
 0x24d   : > { %v3352_v31 = vpop.f32.mrb[83].mxu0 }
 0x24e   : > { %v1442_v63 = vpop.f32.mrb[52].mxu1 }
 0x24f   : > { %v1443_v21 = vadd.f32 %v1442_v63, %v1289_v42  ;;  %v3293_v30 = vpop.f32.mrb[53].mxu1 }
 0x250   : > { %v1445_v52 = vpop.f32.mrb[54].mxu1 }
 0x251   : > { %v1446_v51 = vadd.f32 %v1445_v52, %v1292_v49  ;;  %v3294_v38 = vpop.f32.mrb[55].mxu1  ;;  %v1646_v22 = vadd.f32 %v1619_v50, %v1443_v21 }
 0x252   : > { %v1916_v27 = vpop.f32.mrb[84].mxu0 }
 0x253   : > { %v3355_v34 = vpop.f32.mrb[85].mxu0  ;;  %v1647_v40 = vadd.f32 %v1622_v12, %v1446_v51 }
 0x254   : > { %v1919_v62 = vpop.f32.mrb[86].mxu0 }
 0x255   : > { %v3356_v46 = vpop.f32.mrb[87].mxu0 }
 0x256   : > { %v1450_v33 = vpop.f32.mrb[56].mxu1 }
 0x257   : > { %v1451_v43 = vadd.f32 %v1450_v33, %v1297_v58  ;;  %v3297_v41 = vpop.f32.mrb[57].mxu1 }
 0x258   : > { %v1453_v57 = vpop.f32.mrb[58].mxu1 }
 0x259   : > { %v1454_v54 = vadd.f32 %v1453_v57, %v1300_v60  ;;  %v3298_v56 = vpop.f32.mrb[59].mxu1  ;;  %v1648_v55 = vadd.f32 %v1627_v48, %v1451_v43 }
 0x25a   : > { %v1924_v13 = vpop.f32.mrb[88].mxu0 }
 0x25b   : > { %v3359_v3 = vpop.f32.mrb[89].mxu0  ;;  %v1649_v42 = vadd.f32 %v1630_v59, %v1454_v54 }
 0x25c   : > { %v1927_v29 = vpop.f32.mrb[90].mxu0 }
 0x25d   : > { %v3360_v28 = vpop.f32.mrb[91].mxu0 }
 0x25e   : > { %v1458_v49 = vpop.f32.mrb[60].mxu1 }
 0x25f   : > { %v1459_v6 = vadd.f32 %v1458_v49, %v1305_v7  ;;  %v3301_v50 = vpop.f32.mrb[61].mxu1 }
 0x260   : > { %v1461_v5 = vpop.f32.mrb[62].mxu1 }
 0x261   : > { %v1462_v0 = vadd.f32 %v1461_v5, %v1308_v18  ;;  %v3302_v12 = vpop.f32.mrb[63].mxu1  ;;  %v1650_v20 = vadd.f32 %v1635_v36, %v1459_v6 }
 0x262   : > { %v1932_v8 = vpop.f32.mrb[92].mxu0 }
 0x263   : > { %v3363_v39 = vpop.f32.mrb[93].mxu0  ;;  %v1651_v58 = vadd.f32 %v1638_v44, %v1462_v0 }
 0x264   : > { %v1935_v23 = vpop.f32.mrb[94].mxu0 }
 0x265   : > { %v3364_v24 = vpop.f32.mrb[95].mxu0 }
 0x266   : > { %v1789_v60 = vpop.f32.mrb[64].mxu1 }
 0x267   : > { %v1828_v11 = vadd.f32 %v1789_v60, %v1642_v37  ;;  %v3329_v48 = vpop.f32.mrb[65].mxu1 }
 0x268   : > { %v1792_v14 = vpop.f32.mrb[66].mxu1 }
 0x269   : > { %v1829_v4 = vadd.f32 %v1792_v14, %v1643_v26  ;;  %v3330_v59 = vpop.f32.mrb[67].mxu1  ;;  %v1947_v2 = vadd.f32 %v1908_v53, %v1828_v11 }
 0x26a   : > { %v1940_v61 = vpop.f32.mrb[96].mxu0 }
 0x26b   : > { %v3367_v47 = vpop.f32.mrb[97].mxu0  ;;  %v1948_v7 = vadd.f32 %v1911_v10, %v1829_v4 }
 0x26c   : > { %v1943_v15 = vpop.f32.mrb[98].mxu0 }
 0x26d   : > { %v3368_v16 = vpop.f32.mrb[99].mxu0 }
 0x26e   : > { %v1797_v18 = vpop.f32.mrb[68].mxu1 }
 0x26f   : > { %v1830_v17 = vadd.f32 %v1797_v18, %v1644_v9  ;;  %v3333_v36 = vpop.f32.mrb[69].mxu1 }
 0x270   : > { %v1800_v35 = vpop.f32.mrb[70].mxu1 }
 0x271   : > { %v1831_v25 = vadd.f32 %v1800_v35, %v1645_v45  ;;  %v3334_v44 = vpop.f32.mrb[71].mxu1  ;;  %v1949_v19 = vadd.f32 %v1916_v27, %v1830_v17 }
 0x272   : > { %v2244_v32 = vpop.f32.mrb[100].mxu0 }
 0x273   : > { %v3395_v31 = vpop.f32.mrb[101].mxu0  ;;  %v1950_v37 = vadd.f32 %v1919_v62, %v1831_v25 }
 0x274   : > { %v2247_v63 = vpop.f32.mrb[102].mxu0 }
 0x275   : > { %v3396_v21 = vpop.f32.mrb[103].mxu0 }
 0x276   : > { %v1805_v26 = vpop.f32.mrb[72].mxu1 }
 0x277   : > { %v1832_v30 = vadd.f32 %v1805_v26, %v1646_v22  ;;  %v3337_v53 = vpop.f32.mrb[73].mxu1 }
 0x278   : > { %v1808_v52 = vpop.f32.mrb[74].mxu1 }
 0x279   : > { %v1833_v51 = vadd.f32 %v1808_v52, %v1647_v40  ;;  %v3338_v10 = vpop.f32.mrb[75].mxu1  ;;  %v1951_v38 = vadd.f32 %v1924_v13, %v1832_v30 }
 0x27a   : > { %v2252_v34 = vpop.f32.mrb[104].mxu0 }
 0x27b   : > { %v3399_v46 = vpop.f32.mrb[105].mxu0  ;;  %v1952_v9 = vadd.f32 %v1927_v29, %v1833_v51 }
 0x27c   : > { %v2255_v33 = vpop.f32.mrb[106].mxu0 }
 0x27d   : > { %v3400_v43 = vpop.f32.mrb[107].mxu0 }
 0x27e   : > { %v1813_v45 = vpop.f32.mrb[76].mxu1 }
 0x27f   : > { %v1834_v41 = vadd.f32 %v1813_v45, %v1648_v55  ;;  %v3341_v27 = vpop.f32.mrb[77].mxu1 }
 0x280   : > { %v1816_v57 = vpop.f32.mrb[78].mxu1 }
 0x281   : > { %v1835_v54 = vadd.f32 %v1816_v57, %v1649_v42  ;;  %v3342_v62 = vpop.f32.mrb[79].mxu1  ;;  %v1953_v56 = vadd.f32 %v1932_v8, %v1834_v41 }
 0x282   : > { %v2260_v3 = vpop.f32.mrb[108].mxu0 }
 0x283   : > { %v3403_v28 = vpop.f32.mrb[109].mxu0  ;;  %v1954_v22 = vadd.f32 %v1935_v23, %v1835_v54 }
 0x284   : > { %v2263_v49 = vpop.f32.mrb[110].mxu0 }
 0x285   : > { %v3404_v6 = vpop.f32.mrb[111].mxu0 }
 0x286   : > { %v1821_v40 = vpop.f32.mrb[80].mxu1 }
 0x287   : > { %v1836_v50 = vadd.f32 %v1821_v40, %v1650_v20  ;;  %v3345_v13 = vpop.f32.mrb[81].mxu1 }
 0x288   : > { %v1824_v5 = vpop.f32.mrb[82].mxu1 }
 0x289   : > { %v1837_v0 = vadd.f32 %v1824_v5, %v1651_v58  ;;  %v3346_v29 = vpop.f32.mrb[83].mxu1  ;;  %v1955_v12 = vadd.f32 %v1940_v61, %v1836_v50 }
 0x28a   : > { %v2268_v39 = vpop.f32.mrb[112].mxu0 }
 0x28b   : > { %v3407_v24 = vpop.f32.mrb[113].mxu0  ;;  %v1956_v55 = vadd.f32 %v1943_v15, %v1837_v0 }
 0x28c   : > { %v2271_v60 = vpop.f32.mrb[114].mxu0 }
 0x28d   : > { %v3408_v11 = vpop.f32.mrb[115].mxu0 }
 0x28e   : > { %v2049_v42 = vpop.f32.mrb[84].mxu1 }
 0x28f   : > { %v2088_v48 = vadd.f32 %v2049_v42, %v1947_v2  ;;  %v3373_v8 = vpop.f32.mrb[85].mxu1 }
 0x290   : > { %v2052_v14 = vpop.f32.mrb[86].mxu1  ;;  %v4382_v8 = vld [vmem:[%s4495_s8] ss:$0 sm:$0xff] }
 0x291   : > { %v2089_v4 = vadd.f32 %v2052_v14, %v1948_v7  ;;  %v3374_v23 = vpop.f32.mrb[87].mxu1  ;;  %v2283_v59 = vadd.f32 %v2244_v32, %v2088_v48 }
 0x292   : > { %v2276_v47 = vpop.f32.mrb[116].mxu0 }
 0x293   : > { %v3411_v16 = vpop.f32.mrb[117].mxu0  ;;  %v2284_v20 = vadd.f32 %v2247_v63, %v2089_v4 }
 0x294   : > { %v2279_v18 = vpop.f32.mrb[118].mxu0 }
 0x295   : > { %v3412_v17 = vpop.f32.mrb[119].mxu0 }
 0x296   : > { %v2057_v58 = vpop.f32.mrb[88].mxu1 }
 0x297   : > { %v2090_v36 = vadd.f32 %v2057_v58, %v1949_v19  ;;  %v3377_v61 = vpop.f32.mrb[89].mxu1 }
 0x298   : > { %v2060_v35 = vpop.f32.mrb[90].mxu1 }
 0x299   : > { %v2091_v25 = vadd.f32 %v2060_v35, %v1950_v37  ;;  %v3378_v15 = vpop.f32.mrb[91].mxu1  ;;  %v2285_v44 = vadd.f32 %v2252_v34, %v2090_v36 }
 0x29a   : > { %v2504_v31 = vpop.f32.mrb[120].mxu0 }
 0x29b   : > { %v3439_v21 = vpop.f32.mrb[121].mxu0  ;;  %v2286_v2 = vadd.f32 %v2255_v33, %v2091_v25 }
 0x29c   : > { %v2507_v26 = vpop.f32.mrb[122].mxu0 }
 0x29d   : > { %v3440_v30 = vpop.f32.mrb[123].mxu0 }
 0x29e   : > { %v2065_v7 = vpop.f32.mrb[92].mxu1 }
 0x29f   : > { %v2092_v53 = vadd.f32 %v2065_v7, %v1951_v38  ;;  %v3381_v32 = vpop.f32.mrb[93].mxu1 }
 0x2a0   : > { %v2068_v52 = vpop.f32.mrb[94].mxu1 }
 0x2a1   : > { %v2093_v51 = vadd.f32 %v2068_v52, %v1952_v9  ;;  %v3382_v63 = vpop.f32.mrb[95].mxu1  ;;  %v4367_v10 = vadd.f32 %v2260_v3, %v2092_v53 }
 0x2a2   : > { %v2512_v46 = vpop.f32.mrb[124].mxu0 }
 0x2a3   : > { %v3443_v19 = vpop.f32.mrb[125].mxu0  ;;  %v4369_v43 = vadd.f32 %v2263_v49, %v2093_v51 }
 0x2a4   : > { %v2515_v37 = vpop.f32.mrb[126].mxu0 }
 0x2a5   : > { %v3444_v45 = vpop.f32.mrb[127].mxu0 }
 0x2a6   : > { %v2073_v34 = vpop.f32.mrb[96].mxu1 }
 0x2a7   : > { %v2094_v41 = vadd.f32 %v2073_v34, %v1953_v56  ;;  %v3385_v27 = vpop.f32.mrb[97].mxu1 }
 0x2a8   : > { %v2076_v33 = vpop.f32.mrb[98].mxu1 }
 0x2a9   : > { %v2095_v57 = vadd.f32 %v2076_v33, %v1954_v22  ;;  %v3386_v54 = vpop.f32.mrb[99].mxu1  ;;  %v4371_v62 = vadd.f32 %v2268_v39, %v2094_v41 }
 0x2aa   : > { %v2520_v38 = vpop.f32.mrb[128].mxu0 }
 0x2ab   : > { %v3447_v28 = vpop.f32.mrb[129].mxu0  ;;  %v4373_v9 = vadd.f32 %v2271_v60, %v2095_v57 }
 0x2ac   : > { %v2523_v3 = vpop.f32.mrb[130].mxu0 }
 0x2ad   : > { %v3448_v6 = vpop.f32.mrb[131].mxu0 }
 0x2ae   : > { %v2081_v40 = vpop.f32.mrb[100].mxu1 }
 0x2af   : > { %v2096_v50 = vadd.f32 %v2081_v40, %v1955_v12  ;;  %v3389_v49 = vpop.f32.mrb[101].mxu1 }
 0x2b0   : > { %v2084_v13 = vpop.f32.mrb[102].mxu1 }
 0x2b1   : > { %v2097_v5 = vadd.f32 %v2084_v13, %v1956_v55  ;;  %v3390_v0 = vpop.f32.mrb[103].mxu1  ;;  %v4375_v29 = vadd.f32 %v2276_v47, %v2096_v50 }
 0x2b2   : > { %v2528_v56 = vpop.f32.mrb[132].mxu0 }
 0x2b3   : > { %v3451_v24 = vpop.f32.mrb[133].mxu0  ;;  %v4377_v22 = vadd.f32 %v2279_v18, %v2097_v5 }
 0x2b4   : > { %v2531_v39 = vpop.f32.mrb[134].mxu0 }
 0x2b5   : > { %v3452_v11 = vpop.f32.mrb[135].mxu0 }
 0x2b6   : > { %v2363_v42 = vpop.f32.mrb[104].mxu1 }
 0x2b7   : > { %v2402_v48 = vadd.f32 %v2363_v42, %v2283_v59  ;;  %v3417_v60 = vpop.f32.mrb[105].mxu1 }
 0x2b8   : > { %v2366_v12 = vpop.f32.mrb[106].mxu1 }
 0x2b9   : > { %v2543_v14 = vadd.f32 %v2504_v31, %v2402_v48  ;;  %v2403_v55 = vadd.f32 %v2366_v12, %v2284_v20  ;;  %v3418_v4 = vpop.f32.mrb[107].mxu1 }
 0x2ba   : > { %v2536_v23 = vpop.f32.mrb[136].mxu0 }
 0x2bb   : > { %v2560_v47 = vadd.f32 %v4382_v8, %v2543_v14  ;;  %v2544_v16 = vadd.f32 %v2507_v26, %v2403_v55  ;;  %v3455_v18 = vpop.f32.mrb[137].mxu0 }
 0x2bc   : > { %v2539_v17 = vpop.f32.mrb[138].mxu0 }
 0x2bd   : > { %v2561_v58 = vadd.f32 %v4382_v8, %v2544_v16  ;;  %v3456_v36 = vpop.f32.mrb[139].mxu0  ;;  %v2570_v61 = vmax.f32 %v2560_v47, 0.0  ;;  %v3591_v16 = vld [vmem:[%s3780_s29 + $0x8] sm:$0xff]  }
 0x2be   : > { %v2371_v59 = vpop.f32.mrb[108].mxu1  ;;  %v2587_v18 = vunpack.c.l.bf16 %v3591_v16 }
 0x2bf   : > { %v2571_v35 = vmax.f32 %v2561_v58, 0.0  ;;  %v2404_v25 = vadd.f32 %v2371_v59, %v2285_v44  ;;  %v3421_v15 = vpop.f32.mrb[109].mxu1 }
 0x2c0   : > { %v2374_v21 = vpop.f32.mrb[110].mxu1  ;;  %v2708_v36 = vrot.slane %v2587_v18, 2 }
 0x2c1   : > { %v2580_v30 = vpack.c.bf16 %v2571_v35, %v2570_v61  ;;  %v2545_v7 = vadd.f32 %v2512_v46, %v2404_v25  ;;  %v2405_v31 = vadd.f32 %v2374_v21, %v2286_v2  ;;  %v3422_v20 = vpop.f32.mrb[111].mxu1  ;;  %v3592_v35 = vld [vmem:[%s3780_s29 + $0x10] sm:$0xff]  }
 0x2c2   : > { %v2589_v25 = vunpack.c.l.bf16 %v3592_v35 }
 0x2c3   : > { %v2562_v53 = vadd.f32 %v4382_v8, %v2545_v7  ;;  %v2546_v32 = vadd.f32 %v2515_v37, %v2405_v31  ;;  %3460 = vmatmul.mubr.msk.bf16.vlgmr.msra.gmra.mrb[124].mxu1 %vm1219_vm5, %v2580_v30  ;;  %v2590_v31 = vunpack.c.h.bf16 %v3592_v35 }
 0x2c4   : > { %3463 = vmatprep.mubr.msk.bf16.mxu1 %vm3637_vm0, %v3636_v1 }
 0x2c5   : > { %v2563_v26 = vadd.f32 %v4382_v8, %v2546_v32  ;;  %v2572_v51 = vmax.f32 %v2562_v53, 0.0 }
 0x2c6   : > { %v2379_v52 = vpop.f32.mrb[112].mxu1 }
 0x2c7   : > { %v2573_v63 = vmax.f32 %v2563_v26, 0.0  ;;  %v2406_v44 = vadd.f32 %v2379_v52, %v4367_v10  ;;  %v3425_v19 = vpop.f32.mrb[113].mxu1  ;;  %v2712_v26 = vrot.slane %v2589_v25, 2 }
 0x2c8   : > { %v2382_v45 = vpop.f32.mrb[114].mxu1 }
 0x2c9   : > { %v2581_v46 = vpack.c.bf16 %v2573_v63, %v2572_v51  ;;  %v2547_v2 = vadd.f32 %v2520_v38, %v2406_v44  ;;  %v2407_v34 = vadd.f32 %v2382_v45, %v4369_v43  ;;  %v3426_v41 = vpop.f32.mrb[115].mxu1  ;;  %v2714_v63 = vrot.slane %v2590_v31, 2 }
 0x2cb   : > { %v2564_v37 = vadd.f32 %v4382_v8, %v2547_v2  ;;  %v2548_v27 = vadd.f32 %v2523_v3, %v2407_v34  ;;  %3464 = vmatmul.mubr.msk.bf16.gmra.mrb[128].mxu1 %vm1219_vm5, %v2581_v46  ;;  %v3593_v46 = vld [vmem:[%s3780_s29 + $0x18] sm:$0xff]  }
 0x2cc   : > { %3467 = vmatprep.mubr.msk.bf16.mxu1 %vm3637_vm0, %v3636_v1  ;;  %v2591_v2 = vunpack.c.l.bf16 %v3593_v46 }
 0x2cd   : > { %v2565_v33 = vadd.f32 %v4382_v8, %v2548_v27  ;;  %v2574_v54 = vmax.f32 %v2564_v37, 0.0  ;;  %v2715_v27 = vsel %vm2299_vm9, %v2712_v26, %v2714_v63 }
 0x2ce   : > { %v2387_v57 = vpop.f32.mrb[116].mxu1 }
 0x2cf   : > { %v2575_v10 = vmax.f32 %v2565_v33, 0.0  ;;  %v2408_v28 = vadd.f32 %v2387_v57, %v4371_v62  ;;  %v3429_v6 = vpop.f32.mrb[117].mxu1  ;;  %v2592_v33 = vunpack.c.h.bf16 %v3593_v46 }
 0x2d0   : > { %v2390_v38 = vpop.f32.mrb[118].mxu1 }
 0x2d1   : > { %v2582_v40 = vpack.c.bf16 %v2575_v10, %v2574_v54  ;;  %v2549_v43 = vadd.f32 %v2528_v56, %v2408_v28  ;;  %v2409_v50 = vadd.f32 %v2390_v38, %v4373_v9  ;;  %v3430_v49 = vpop.f32.mrb[119].mxu1  ;;  %v2716_v28 = vrot.slane %v2591_v2, 2 }
 0x2d3   : > { %v2566_v3 = vadd.f32 %v4382_v8, %v2549_v43  ;;  %v2550_v13 = vadd.f32 %v2531_v39, %v2409_v50  ;;  %3468 = vmatmul.mubr.msk.bf16.gmra.mrb[132].mxu1 %vm1219_vm5, %v2582_v40  ;;  %v2718_v40 = vrot.slane %v2592_v33, 2  ;;  %v2717_v49 = vsel %vm2299_vm9, %v2714_v63, %v2716_v28 }
 0x2d4   : > { %3471 = vmatprep.mubr.msk.bf16.mxu1 %vm3637_vm0, %v3636_v1 }
 0x2d5   : > { %v2567_v5 = vadd.f32 %v4382_v8, %v2550_v13  ;;  %v2576_v24 = vmax.f32 %v2566_v3, 0.0  ;;  %v3594_v3 = vld [vmem:[%s3780_s29 + $0x20] sm:$0xff]  }
 0x2d6   : > { %v2395_v0 = vpop.f32.mrb[120].mxu1  ;;  %v2593_v13 = vunpack.c.l.bf16 %v3594_v3 }
 0x2d7   : > { %v2577_v62 = vmax.f32 %v2567_v5, 0.0  ;;  %v2410_v11 = vadd.f32 %v2395_v0, %v4375_v29  ;;  %v3433_v56 = vpop.f32.mrb[121].mxu1 }
 0x2d8   : > { %v2398_v9 = vpop.f32.mrb[122].mxu1 }
 0x2d9   : > { %v2583_v42 = vpack.c.bf16 %v2577_v62, %v2576_v24  ;;  %v2551_v48 = vadd.f32 %v2536_v23, %v2410_v11  ;;  %v2411_v39 = vadd.f32 %v2398_v9, %v4377_v22  ;;  %v3434_v60 = vpop.f32.mrb[123].mxu1  ;;  %v3590_v22 = vld [vmem:[%s3780_s29] sm:$0xff]   ;;  %v2719_v62 = vsel %vm2299_vm9, %v2716_v28, %v2718_v40 }
 0x2da   : > { %v2586_v23 = vunpack.c.h.bf16 %v3590_v22  ;;  %v2594_v11 = vunpack.c.h.bf16 %v3594_v3 }
 0x2db   : > { %v2568_v12 = vadd.f32 %v4382_v8, %v2551_v48  ;;  %v2552_v14 = vadd.f32 %v2539_v17, %v2411_v39  ;;  %3472 = vmatmul.mubr.msk.bf16.gmra.mrb[136].mxu1 %vm1219_vm5, %v2583_v42  ;;  %v2588_v17 = vunpack.c.h.bf16 %v3591_v16  ;;  %v2720_v48 = vrot.slane %v2593_v13, 2 }
 0x2dc   : > { %3475 = vmatprep.mubr.msk.bf16.mxu1 %vm3637_vm0, %v3636_v1  ;;  %v2707_v58 = vrot.slane %v2586_v23, 2  ;;  %v4421_v1 = vld [vmem:[%s4496_s9] ss:$0 sm:$0xff] }
 0x2dd   : > { %v2569_v29 = vadd.f32 %v4382_v8, %v2552_v14  ;;  %v2578_v55 = vmax.f32 %v2568_v12, 0.0  ;;  %v2710_v8 = vrot.slane %v2588_v17, 2  ;;  %v2722_v12 = vrot.slane %v2594_v11, 2 }
 0x2de   : > { %v2709_v61 = vsel %vm2299_vm9, %v2707_v58, %v2708_v36 }
 0x2df   : > { %v2579_v4 = vmax.f32 %v2569_v29, 0.0  ;;  %v2711_v7 = vsel %vm2299_vm9, %v2708_v36, %v2710_v8  ;;  %v2713_v45 = vsel %vm2299_vm9, %v2710_v8, %v2712_v26  ;;  %v2723_v18 = vsel %vm2299_vm9, %v2720_v48, %v2722_v12 }
 0x2e1   : > { %v2584_v47 = vpack.c.bf16 %v2579_v4, %v2578_v55  ;;  %v2721_v55 = vsel %vm2299_vm9, %v2718_v40, %v2720_v48  ;;  %v3595_v4 = vld [vmem:[%s3780_s29 + $0x28] sm:$0xff]  }
 0x2e2   : > { %v2596_v17 = vunpack.c.h.bf16 %v3595_v4 }
 0x2e3   : > { %3476 = vmatmul.mubr.msk.bf16.gmra.mrb[140].mxu1 %vm1219_vm5, %v2584_v47  ;;  %v2595_v47 = vunpack.c.l.bf16 %v3595_v4 }
 0x2e4   : > { %v2726_v25 = vrot.slane %v2596_v17, 2 }
 0x396   : > { %v2656_v59 = vpop.f32.mrb[124].mxu1 }
 0x397   : > { %v2657_v15 = vadd.f32 %v4421_v1, %v2656_v59  ;;  %v3461_v21 = vpop.f32.mrb[125].mxu1  ;;  %v2724_v59 = vrot.slane %v2595_v47, 2 }
 0x398   : > { %v2659_v30 = vpop.f32.mrb[126].mxu1 }
 0x399   : > { %v2738_v20 = vadd.f32 %v2709_v61, %v2657_v15  ;;  %v2660_v53 = vadd.f32 %v4421_v1, %v2659_v30  ;;  %v3462_v32 = vpop.f32.mrb[127].mxu1  ;;  %v2725_v30 = vsel %vm2299_vm9, %v2722_v12, %v2724_v59 }
 0x39b   : > { %v2748_v52 = vmax.f32 %v2738_v20, 0.0  ;;  %v2739_v51 = vadd.f32 %v2711_v7, %v2660_v53  ;;  %v2727_v53 = vsel %vm2299_vm9, %v2724_v59, %v2726_v25 }
 0x39d   : > { %2758 = vst.msk [vmem:[%s4431_s21] sm:$0xff] %vm549_vm2, %v2748_v52  ;;  %v2749_v44 = vmax.f32 %v2739_v51, 0.0 }
 0x39e   : > { %v2664_v19 = vpop.f32.mrb[128].mxu1 }
 0x39f   : > { %2759 = vst.msk [vmem:[%s4431_s21 + $0x8] sm:$0xff] %vm549_vm2, %v2749_v44  ;;  %v2665_v34 = vadd.f32 %v4421_v1, %v2664_v19  ;;  %v3465_v41 = vpop.f32.mrb[129].mxu1 }
 0x3a0   : > { %v2667_v37 = vpop.f32.mrb[130].mxu1 }
 0x3a1   : > { %v2740_v57 = vadd.f32 %v2713_v45, %v2665_v34  ;;  %v2668_v54 = vadd.f32 %v4421_v1, %v2667_v37  ;;  %v3466_v10 = vpop.f32.mrb[131].mxu1 }
 0x3a3   : > { %v2750_v6 = vmax.f32 %v2740_v57, 0.0  ;;  %v2741_v38 = vadd.f32 %v2715_v27, %v2668_v54 }
 0x3a5   : > { %2760 = vst.msk [vmem:[%s4431_s21 + $0x10] sm:$0xff] %vm549_vm2, %v2750_v6  ;;  %v2751_v43 = vmax.f32 %v2741_v38, 0.0 }
 0x3a6   : > { %v2672_v50 = vpop.f32.mrb[132].mxu1 }
 0x3a7   : > { %2761 = vst.msk [vmem:[%s4431_s21 + $0x18] sm:$0xff] %vm549_vm2, %v2751_v43  ;;  %v2673_v5 = vadd.f32 %v4421_v1, %v2672_v50  ;;  %v3469_v0 = vpop.f32.mrb[133].mxu1 }
 0x3a8   : > { %v2675_v24 = vpop.f32.mrb[134].mxu1 }
 0x3a9   : > { %v2742_v56 = vadd.f32 %v2717_v49, %v2673_v5  ;;  %v2676_v9 = vadd.f32 %v4421_v1, %v2675_v24  ;;  %v3470_v42 = vpop.f32.mrb[135].mxu1 }
 0x3ab   : > { %v2752_v39 = vmax.f32 %v2742_v56, 0.0  ;;  %v2743_v60 = vadd.f32 %v2719_v62, %v2676_v9 }
 0x3ad   : > { %2762 = vst.msk [vmem:[%s4431_s21 + $0x20] sm:$0xff] %vm549_vm2, %v2752_v39  ;;  %v2753_v14 = vmax.f32 %v2743_v60, 0.0 }
 0x3ae   : > { %v2680_v29 = vpop.f32.mrb[136].mxu1 }
 0x3af   : > { %2763 = vst.msk [vmem:[%s4431_s21 + $0x28] sm:$0xff] %vm549_vm2, %v2753_v14  ;;  %v2681_v22 = vadd.f32 %v4421_v1, %v2680_v29  ;;  %v3473_v23 = vpop.f32.mrb[137].mxu1 }
 0x3b0   : > { %v2683_v16 = vpop.f32.mrb[138].mxu1 }
 0x3b1   : > { %v2744_v58 = vadd.f32 %v2721_v55, %v2681_v22  ;;  %v2684_v36 = vadd.f32 %v4421_v1, %v2683_v16  ;;  %v3474_v8 = vpop.f32.mrb[139].mxu1 }
 0x3b3   : > { %v2754_v61 = vmax.f32 %v2744_v58, 0.0  ;;  %v2745_v35 = vadd.f32 %v2723_v18, %v2684_v36 }
 0x3b5   : > { %2764 = vst.msk [vmem:[%s4431_s21 + $0x30] sm:$0xff] %vm549_vm2, %v2754_v61  ;;  %v2755_v15 = vmax.f32 %v2745_v35, 0.0 }
 0x3b6   : > { %v2688_v21 = vpop.f32.mrb[140].mxu1 }
 0x3b7   : > { %2765 = vst.msk [vmem:[%s4431_s21 + $0x38] sm:$0xff] %vm549_vm2, %v2755_v15  ;;  %v2689_v7 = vadd.f32 %v4421_v1, %v2688_v21  ;;  %v3477_v31 = vpop.f32.mrb[141].mxu1 }
 0x3b8   : > { %v2691_v20 = vpop.f32.mrb[142].mxu1 }
 0x3b9   : > { %v2746_v32 = vadd.f32 %v2725_v30, %v2689_v7  ;;  %v2692_v26 = vadd.f32 %v4421_v1, %v2691_v20  ;;  %v3478_v52 = vpop.f32.mrb[143].mxu1 }
 0x3bb   : > { %v2756_v51 = vmax.f32 %v2746_v32, 0.0  ;;  %v2747_v63 = vadd.f32 %v2727_v53, %v2692_v26 }
 0x3bd   : > { %2766 = vst.msk [vmem:[%s4431_s21 + $0x40] sm:$0xff] %vm549_vm2, %v2756_v51  ;;  %v2757_v44 = vmax.f32 %v2747_v63, 0.0 }
 0x3bf   : > { %2767 = vst.msk [vmem:[%s4431_s21 + $0x48] sm:$0xff] %vm549_vm2, %v2757_v44 }
 0x3c0 PF: > { %s20_s17 = sadd.s32 1, %s3634_s17   ;;  %s4499_s29 = sld [smem:[#allocation3_spill]] }
 0x3c1   : > { %p17_p10 = scmp.ge.s32.totalorder %s20_s17, 10   ;;  %s4500_s13 = smov %s3626_s15 }
 0x3c2   : > { %s4501_s14 = smov %s3630_s16  ;;  %s4502_s15 = smov %s4505_s18 }
 0x3c3   :  { %19 = sbr.rel (!%p17_p10) target bundleno = 3 (0x3), region = 106 }
 0x3c6   : > { %s4503_s16 = smov %s4499_s29 }

</bundles_post_ra>
